<compile_context>
chip_gen: v5e
topology: v5e:2x2
jax: 0.10.0
libtpu: 0.0.40
codegen_flags: <defaults>
</compile_context>

<pallas_src>
import math

import jax
import jax.numpy as jnp
from jax.experimental import pallas as pl
from jax.experimental.pallas import tpu as pltpu

D = 2            # flow dimensionality
H1, H2 = 10, 10  # MADE hidden sizes
LOG_2PI = math.log(2.0 * math.pi)
LANES = 128      # TPU lane width
STRIP = 8        # rows per inner strip (1 f32 vreg per named value)

# ---- packed parameter layout (static offsets into the SMEM prefetch buffer) -
# Specialized to the D=2 MADE masks: only w1[0,:], w3[:,1], w3[:,3] are kept.
OFF_W1 = 0                        # w1[0, :]                     (H1)
OFF_B1 = OFF_W1 + H1              # b1                           (H1)
OFF_W2 = OFF_B1 + H1              # w2 row-major (i*H2 + j)      (H1*H2)
OFF_B2 = OFF_W2 + H1 * H2         # b2                           (H2)
OFF_W3_MU1 = OFF_B2 + H2          # w3[:, 1]  (mu_1 column)      (H2)
OFF_W3_A1 = OFF_W3_MU1 + H2       # w3[:, 3]  (alpha_1 column)   (H2)
OFF_B3_MU1 = OFF_W3_A1 + H2       # b3[1]
OFF_B3_A1 = OFF_B3_MU1 + 1        # b3[3]
OFF_SCALE0 = OFF_B3_A1 + 1        # exp(-alpha_0) = exp(-b3[2])
OFF_SHIFT0 = OFF_SCALE0 + 1       # mu_0*exp(-alpha_0) + 1
OFF_C_TAIL = OFF_SHIFT0 + 1       # -(0.5*D*log(2*pi) + alpha_0)
N_PARAMS = OFF_C_TAIL + 1         # 155


def normflow_kernel(w_ref, x_ref, out_ref):
    """Fused Reverse.inverse -> MADE MLP (VPU FMAs) -> MAF.inverse -> logp - J.

    w_ref   : (155,) f32 packed params (SMEM, scalar-prefetch, resident).
    x_ref   : (2, tr, 128) f32 slab; x_ref[f] = original feature f, batch on
              sublanes x lanes.
    out_ref : (tr, 128) f32 lane-dense log-prob slab.
    """
    # Hoisted scalar parameter reads (loop-invariant SMEM loads / sreg operands).
    w1 = [w_ref[OFF_W1 + j] for j in range(H1)]
    b1 = [w_ref[OFF_B1 + j] for j in range(H1)]
    w2 = [[w_ref[OFF_W2 + i * H2 + j] for j in range(H2)] for i in range(H1)]
    b2 = [w_ref[OFF_B2 + j] for j in range(H2)]
    w3m = [w_ref[OFF_W3_MU1 + i] for i in range(H2)]
    w3a = [w_ref[OFF_W3_A1 + i] for i in range(H2)]
    b3_mu1 = w_ref[OFF_B3_MU1]
    b3_a1 = w_ref[OFF_B3_A1]
    scale0 = w_ref[OFF_SCALE0]
    shift0 = w_ref[OFF_SHIFT0]
    c_tail = w_ref[OFF_C_TAIL]

    n_strips = out_ref.shape[0] // STRIP

    # Strip-mined inner loop: bounds vreg live ranges to ~25 vregs per strip.
    @pl.loop(0, n_strips)
    def _(s):
        r = pl.multiple_of(s * STRIP, STRIP)
        # Reverse(D).inverse folded into operand order (zero cost):
        xr0 = x_ref[1, pl.ds(r, STRIP), :]      # xr[0] = original x[:, 1]
        xr1 = x_ref[0, pl.ds(r, STRIP), :]      # xr[1] = original x[:, 0]

        # MADE layer 1 : D -> H1. The xr[1] row of W1 is zero by the MADE
        # mask (D=2, all hidden degrees == 1) -> dropped entirely.
        h1 = [jnp.maximum(xr0 * w1[j] + b1[j], 0.0) for j in range(H1)]

        # MADE layer 2 : H1 -> H2 (dense).
        h2 = []
        for j in range(H2):
            acc = h1[0] * w2[0][j]
            for i in range(1, H1):
                acc = acc + h1[i] * w2[i][j]
            h2.append(jnp.maximum(acc + b2[j], 0.0))

        # MADE layer 3 : H2 -> 2D.  Columns 0 and 2 (mu_0, alpha_0) are zero
        # by the mask -> mu_0/alpha_0 are parameter constants, folded
        # wrapper-side into scale0 / shift0 / c_tail.
        mu1 = h2[0] * w3m[0]
        a1 = h2[0] * w3a[0]
        for i in range(1, H2):
            mu1 = mu1 + h2[i] * w3m[i]
            a1 = a1 + h2[i] * w3a[i]
        mu1 = mu1 + b3_mu1
        a1 = a1 + b3_a1

        # MAF.inverse + base MVN(mean=1, cov=I) log prob, tail constants folded:
        #   d0 = (xr0 - mu0)*exp(-a0) - 1 = xr0*scale0 - shift0
        #   out = -0.5*(d0^2 + d1^2) - 0.5*D*log(2*pi) - a0 - a1
        d0 = xr0 * scale0 - shift0
        d1 = (xr1 - mu1) * jnp.exp(-a1) - 1.0   # exp may overflow exactly as in ref
        out_ref[pl.ds(r, STRIP), :] = c_tail - a1 - 0.5 * (d0 * d0 + d1 * d1)


def make_params(key):
    """Deterministic init of the MADE network (Linear D->10->10->2D) + MADE masks."""
    def linear(k, fan_in, fan_out):
        bound = 1.0 / math.sqrt(fan_in)
        kw, kb = jax.random.split(k)
        w = jax.random.uniform(kw, (fan_in, fan_out), jnp.float32, -bound, bound)
        b = jax.random.uniform(kb, (1, fan_out), jnp.float32, -bound, bound)
        return w, b

    k1, k2, k3 = jax.random.split(key, 3)
    w1, b1 = linear(k1, D, H1)
    w2, b2 = linear(k2, H1, H2)
    w3, b3 = linear(k3, H2, 2 * D)

    # MADE degrees / masks (Germain et al.).  For D=2 all hidden degrees are 1.
    m_in = jnp.arange(1, D + 1)                       # (D,)
    m_h1 = jnp.ones((H1,), jnp.int32)
    m_h2 = jnp.ones((H2,), jnp.int32)
    m_out = jnp.tile(jnp.arange(1, D + 1), 2)         # (2D,) -> [mu_1, mu_2, a_1, a_2]

    mask1 = (m_h1[None, :] >= m_in[:, None]).astype(jnp.float32)   # (D,  H1)
    mask2 = (m_h2[None, :] >= m_h1[:, None]).astype(jnp.float32)   # (H1, H2)
    mask3 = (m_out[None, :] > m_h2[:, None]).astype(jnp.float32)   # (H2, 2D)

    return (w1 * mask1, b1, w2 * mask2, b2, w3 * mask3, b3)


def pack_params(params):
    """Pack the mask-specialized parameter set + pre-folded tail constants."""
    w1, b1, w2, b2, w3, b3 = params
    b3f = b3.reshape(-1)
    mu0 = b3f[0]                    # mask makes mu_0 input-independent
    a0 = b3f[2]                     # mask makes alpha_0 input-independent
    scale0 = jnp.exp(-a0)
    packed = jnp.concatenate([
        w1[0, :],                                   # w1[1,:] is zero (MADE mask)
        b1.reshape(-1),
        w2.reshape(-1),
        b2.reshape(-1),
        w3[:, 1],                                   # mu_1 column
        w3[:, 3],                                   # alpha_1 column
        jnp.stack([b3f[1], b3f[3], scale0,
                   mu0 * scale0 + 1.0,
                   -(0.5 * D * LOG_2PI + a0)]),
    ]).astype(jnp.float32)
    assert packed.shape == (N_PARAMS,)
    return packed


def normflow_log_prob(x, params, tile_rows=512):
    """NormFlowDE.forward(x) == log_prob(x); returns (N, 1) float32."""
    n = x.shape[0]
    assert x.shape[1] == D
    w_packed = pack_params(params)

    # Batch mapped onto sublanes x lanes: pad to (total_rows * 128) elements.
    rows_needed = -(-n // LANES)                 # ceil(n / 128)
    rows_needed = -(-rows_needed // 8) * 8       # round up to multiple of 8 sublanes
    tr = max(8, (min(int(tile_rows), rows_needed) // 8) * 8)
    # v7x megacore: keep >= 2 grid steps whenever the slab allows a split.
    if rows_needed >= 16:
        tr = min(tr, max(8, (rows_needed // 2) // 8 * 8))
    total_rows = -(-rows_needed // tr) * tr
    n_pad = total_rows * LANES

    xp = jnp.pad(x.astype(jnp.float32), ((0, n_pad - n), (0, 0)))    # (n_pad, D)
    x_slab = xp.T.reshape(D, total_rows, LANES)                      # (D, rows, 128)

    out_slab = pl.pallas_call(
        normflow_kernel,
        out_shape=jax.ShapeDtypeStruct((total_rows, LANES), jnp.float32),
        grid_spec=pltpu.PrefetchScalarGridSpec(
            num_scalar_prefetch=1,                                   # packed weights -> SMEM
            grid=(total_rows // tr,),
            in_specs=[pl.BlockSpec((D, tr, LANES), lambda i, w: (0, i, 0))],
            out_specs=pl.BlockSpec((tr, LANES), lambda i, w: (i, 0)),
        ),
        compiler_params=pltpu.CompilerParams(
            dimension_semantics=("parallel",)),                      # megacore split on v7x
    )(w_packed, x_slab)

    return out_slab.reshape(n_pad)[:n].reshape(n, 1)


def normflow_log_prob_ref(x, params):
    """Pure-JAX reference (general, un-specialized) for verification."""
    w1, b1, w2, b2, w3, b3 = params
    xr = x[:, ::-1]
    h1 = jax.nn.relu(xr @ w1 + b1)
    h2 = jax.nn.relu(h1 @ w2 + b2)
    out = h2 @ w3 + b3
    mu, alpha = out[:, :D], out[:, D:]
    u = (xr - mu) * jnp.exp(-alpha)
    j = jnp.sum(alpha, axis=-1, keepdims=True)
    logp = -0.5 * jnp.sum((u - 1.0) ** 2, axis=-1, keepdims=True) - 0.5 * D * LOG_2PI
    return logp - j


# TODO(synk): NormFlowDE.sample() (base-dist sampling + sequential autoregressive
# MAF forward) is not part of forward() and is left unimplemented.

if __name__ == "__main__":
    key = jax.random.PRNGKey(0)
    k_param, k_x, k_x2, k_x3 = jax.random.split(key, 4)

    params = make_params(k_param)
    # The kernel is specialized to the D=2 MADE mask structure; verify it holds.
    w1, _, _, _, w3, _ = params
    assert float(jnp.abs(w1[1]).max()) == 0.0
    assert float(jnp.abs(w3[:, 0]).max()) == 0.0
    assert float(jnp.abs(w3[:, 2]).max()) == 0.0

    # Small example consistent with the module: x = torch.rand(N, D).
    x = jax.random.uniform(k_x, (16, D), jnp.float32)
    out = jax.block_until_ready(normflow_log_prob(x, params))
    ref = normflow_log_prob_ref(x, params)
    assert out.shape == (16, 1)
    assert jnp.allclose(out, ref, atol=1e-4, rtol=1e-5), (out, ref)

    # Exercises multiple grid steps AND multiple inner strips per tile.
    x2 = jax.random.uniform(k_x2, (8192, D), jnp.float32)
    out2 = jax.block_until_ready(normflow_log_prob(x2, params))
    ref2 = normflow_log_prob_ref(x2, params)
    assert out2.shape == (8192, 1)
    assert jnp.allclose(out2, ref2, atol=1e-4, rtol=1e-5)

    # Exercises padding of a non-multiple-of-128 batch with a tiny tile.
    x3 = jax.random.uniform(k_x3, (1000, D), jnp.float32)
    out3 = jax.block_until_ready(normflow_log_prob(x3, params, tile_rows=8))
    ref3 = normflow_log_prob_ref(x3, params)
    assert out3.shape == (1000, 1)
    assert jnp.allclose(out3, ref3, atol=1e-4, rtol=1e-5)

    print("KERNEL_OK")
</pallas_src>

<mosaic_0001>
module attributes {stable_mosaic.version = 11 : i64} {
  func.func @normflow_kernel(%arg0: i32, %arg1: memref<155xf32, #tpu.memory_space<smem>>, %arg2: memref<2x8x128xf32, #tpu.memory_space<vmem>>, %arg3: memref<8x128xf32, #tpu.memory_space<vmem>>) attributes {dimension_semantics = [#tpu.dimension_semantics<parallel>], iteration_bounds = array<i64: 1>, scalar_prefetch = 1 : i64, scratch_operands = 0 : i64, tpu.core_type = #tpu.core_type<tc>, window_params = [{transform_indices = @transform_0, window_bounds = array<i64: 2, 8, 128>}, {transform_indices = @transform_1, window_bounds = array<i64: 8, 128>}]} {
    %c0 = arith.constant 0 : index
    %0 = memref.load %arg1[%c0] : memref<155xf32, #tpu.memory_space<smem>>
    %c1 = arith.constant 1 : index
    %1 = memref.load %arg1[%c1] : memref<155xf32, #tpu.memory_space<smem>>
    %c2 = arith.constant 2 : index
    %2 = memref.load %arg1[%c2] : memref<155xf32, #tpu.memory_space<smem>>
    %c3 = arith.constant 3 : index
    %3 = memref.load %arg1[%c3] : memref<155xf32, #tpu.memory_space<smem>>
    %c4 = arith.constant 4 : index
    %4 = memref.load %arg1[%c4] : memref<155xf32, #tpu.memory_space<smem>>
    %c5 = arith.constant 5 : index
    %5 = memref.load %arg1[%c5] : memref<155xf32, #tpu.memory_space<smem>>
    %c6 = arith.constant 6 : index
    %6 = memref.load %arg1[%c6] : memref<155xf32, #tpu.memory_space<smem>>
    %c7 = arith.constant 7 : index
    %7 = memref.load %arg1[%c7] : memref<155xf32, #tpu.memory_space<smem>>
    %c8 = arith.constant 8 : index
    %8 = memref.load %arg1[%c8] : memref<155xf32, #tpu.memory_space<smem>>
    %c9 = arith.constant 9 : index
    %9 = memref.load %arg1[%c9] : memref<155xf32, #tpu.memory_space<smem>>
    %c10 = arith.constant 10 : index
    %10 = memref.load %arg1[%c10] : memref<155xf32, #tpu.memory_space<smem>>
    %c11 = arith.constant 11 : index
    %11 = memref.load %arg1[%c11] : memref<155xf32, #tpu.memory_space<smem>>
    %c12 = arith.constant 12 : index
    %12 = memref.load %arg1[%c12] : memref<155xf32, #tpu.memory_space<smem>>
    %c13 = arith.constant 13 : index
    %13 = memref.load %arg1[%c13] : memref<155xf32, #tpu.memory_space<smem>>
    %c14 = arith.constant 14 : index
    %14 = memref.load %arg1[%c14] : memref<155xf32, #tpu.memory_space<smem>>
    %c15 = arith.constant 15 : index
    %15 = memref.load %arg1[%c15] : memref<155xf32, #tpu.memory_space<smem>>
    %c16 = arith.constant 16 : index
    %16 = memref.load %arg1[%c16] : memref<155xf32, #tpu.memory_space<smem>>
    %c17 = arith.constant 17 : index
    %17 = memref.load %arg1[%c17] : memref<155xf32, #tpu.memory_space<smem>>
    %c18 = arith.constant 18 : index
    %18 = memref.load %arg1[%c18] : memref<155xf32, #tpu.memory_space<smem>>
    %c19 = arith.constant 19 : index
    %19 = memref.load %arg1[%c19] : memref<155xf32, #tpu.memory_space<smem>>
    %c20 = arith.constant 20 : index
    %20 = memref.load %arg1[%c20] : memref<155xf32, #tpu.memory_space<smem>>
    %c21 = arith.constant 21 : index
    %21 = memref.load %arg1[%c21] : memref<155xf32, #tpu.memory_space<smem>>
    %c22 = arith.constant 22 : index
    %22 = memref.load %arg1[%c22] : memref<155xf32, #tpu.memory_space<smem>>
    %c23 = arith.constant 23 : index
    %23 = memref.load %arg1[%c23] : memref<155xf32, #tpu.memory_space<smem>>
    %c24 = arith.constant 24 : index
    %24 = memref.load %arg1[%c24] : memref<155xf32, #tpu.memory_space<smem>>
    %c25 = arith.constant 25 : index
    %25 = memref.load %arg1[%c25] : memref<155xf32, #tpu.memory_space<smem>>
    %c26 = arith.constant 26 : index
    %26 = memref.load %arg1[%c26] : memref<155xf32, #tpu.memory_space<smem>>
    %c27 = arith.constant 27 : index
    %27 = memref.load %arg1[%c27] : memref<155xf32, #tpu.memory_space<smem>>
    %c28 = arith.constant 28 : index
    %28 = memref.load %arg1[%c28] : memref<155xf32, #tpu.memory_space<smem>>
    %c29 = arith.constant 29 : index
    %29 = memref.load %arg1[%c29] : memref<155xf32, #tpu.memory_space<smem>>
    %c30 = arith.constant 30 : index
    %30 = memref.load %arg1[%c30] : memref<155xf32, #tpu.memory_space<smem>>
    %c31 = arith.constant 31 : index
    %31 = memref.load %arg1[%c31] : memref<155xf32, #tpu.memory_space<smem>>
    %c32 = arith.constant 32 : index
    %32 = memref.load %arg1[%c32] : memref<155xf32, #tpu.memory_space<smem>>
    %c33 = arith.constant 33 : index
    %33 = memref.load %arg1[%c33] : memref<155xf32, #tpu.memory_space<smem>>
    %c34 = arith.constant 34 : index
    %34 = memref.load %arg1[%c34] : memref<155xf32, #tpu.memory_space<smem>>
    %c35 = arith.constant 35 : index
    %35 = memref.load %arg1[%c35] : memref<155xf32, #tpu.memory_space<smem>>
    %c36 = arith.constant 36 : index
    %36 = memref.load %arg1[%c36] : memref<155xf32, #tpu.memory_space<smem>>
    %c37 = arith.constant 37 : index
    %37 = memref.load %arg1[%c37] : memref<155xf32, #tpu.memory_space<smem>>
    %c38 = arith.constant 38 : index
    %38 = memref.load %arg1[%c38] : memref<155xf32, #tpu.memory_space<smem>>
    %c39 = arith.constant 39 : index
    %39 = memref.load %arg1[%c39] : memref<155xf32, #tpu.memory_space<smem>>
    %c40 = arith.constant 40 : index
    %40 = memref.load %arg1[%c40] : memref<155xf32, #tpu.memory_space<smem>>
    %c41 = arith.constant 41 : index
    %41 = memref.load %arg1[%c41] : memref<155xf32, #tpu.memory_space<smem>>
    %c42 = arith.constant 42 : index
    %42 = memref.load %arg1[%c42] : memref<155xf32, #tpu.memory_space<smem>>
    %c43 = arith.constant 43 : index
    %43 = memref.load %arg1[%c43] : memref<155xf32, #tpu.memory_space<smem>>
    %c44 = arith.constant 44 : index
    %44 = memref.load %arg1[%c44] : memref<155xf32, #tpu.memory_space<smem>>
    %c45 = arith.constant 45 : index
    %45 = memref.load %arg1[%c45] : memref<155xf32, #tpu.memory_space<smem>>
    %c46 = arith.constant 46 : index
    %46 = memref.load %arg1[%c46] : memref<155xf32, #tpu.memory_space<smem>>
    %c47 = arith.constant 47 : index
    %47 = memref.load %arg1[%c47] : memref<155xf32, #tpu.memory_space<smem>>
    %c48 = arith.constant 48 : index
    %48 = memref.load %arg1[%c48] : memref<155xf32, #tpu.memory_space<smem>>
    %c49 = arith.constant 49 : index
    %49 = memref.load %arg1[%c49] : memref<155xf32, #tpu.memory_space<smem>>
    %c50 = arith.constant 50 : index
    %50 = memref.load %arg1[%c50] : memref<155xf32, #tpu.memory_space<smem>>
    %c51 = arith.constant 51 : index
    %51 = memref.load %arg1[%c51] : memref<155xf32, #tpu.memory_space<smem>>
    %c52 = arith.constant 52 : index
    %52 = memref.load %arg1[%c52] : memref<155xf32, #tpu.memory_space<smem>>
    %c53 = arith.constant 53 : index
    %53 = memref.load %arg1[%c53] : memref<155xf32, #tpu.memory_space<smem>>
    %c54 = arith.constant 54 : index
    %54 = memref.load %arg1[%c54] : memref<155xf32, #tpu.memory_space<smem>>
    %c55 = arith.constant 55 : index
    %55 = memref.load %arg1[%c55] : memref<155xf32, #tpu.memory_space<smem>>
    %c56 = arith.constant 56 : index
    %56 = memref.load %arg1[%c56] : memref<155xf32, #tpu.memory_space<smem>>
    %c57 = arith.constant 57 : index
    %57 = memref.load %arg1[%c57] : memref<155xf32, #tpu.memory_space<smem>>
    %c58 = arith.constant 58 : index
    %58 = memref.load %arg1[%c58] : memref<155xf32, #tpu.memory_space<smem>>
    %c59 = arith.constant 59 : index
    %59 = memref.load %arg1[%c59] : memref<155xf32, #tpu.memory_space<smem>>
    %c60 = arith.constant 60 : index
    %60 = memref.load %arg1[%c60] : memref<155xf32, #tpu.memory_space<smem>>
    %c61 = arith.constant 61 : index
    %61 = memref.load %arg1[%c61] : memref<155xf32, #tpu.memory_space<smem>>
    %c62 = arith.constant 62 : index
    %62 = memref.load %arg1[%c62] : memref<155xf32, #tpu.memory_space<smem>>
    %c63 = arith.constant 63 : index
    %63 = memref.load %arg1[%c63] : memref<155xf32, #tpu.memory_space<smem>>
    %c64 = arith.constant 64 : index
    %64 = memref.load %arg1[%c64] : memref<155xf32, #tpu.memory_space<smem>>
    %c65 = arith.constant 65 : index
    %65 = memref.load %arg1[%c65] : memref<155xf32, #tpu.memory_space<smem>>
    %c66 = arith.constant 66 : index
    %66 = memref.load %arg1[%c66] : memref<155xf32, #tpu.memory_space<smem>>
    %c67 = arith.constant 67 : index
    %67 = memref.load %arg1[%c67] : memref<155xf32, #tpu.memory_space<smem>>
    %c68 = arith.constant 68 : index
    %68 = memref.load %arg1[%c68] : memref<155xf32, #tpu.memory_space<smem>>
    %c69 = arith.constant 69 : index
    %69 = memref.load %arg1[%c69] : memref<155xf32, #tpu.memory_space<smem>>
    %c70 = arith.constant 70 : index
    %70 = memref.load %arg1[%c70] : memref<155xf32, #tpu.memory_space<smem>>
    %c71 = arith.constant 71 : index
    %71 = memref.load %arg1[%c71] : memref<155xf32, #tpu.memory_space<smem>>
    %c72 = arith.constant 72 : index
    %72 = memref.load %arg1[%c72] : memref<155xf32, #tpu.memory_space<smem>>
    %c73 = arith.constant 73 : index
    %73 = memref.load %arg1[%c73] : memref<155xf32, #tpu.memory_space<smem>>
    %c74 = arith.constant 74 : index
    %74 = memref.load %arg1[%c74] : memref<155xf32, #tpu.memory_space<smem>>
    %c75 = arith.constant 75 : index
    %75 = memref.load %arg1[%c75] : memref<155xf32, #tpu.memory_space<smem>>
    %c76 = arith.constant 76 : index
    %76 = memref.load %arg1[%c76] : memref<155xf32, #tpu.memory_space<smem>>
    %c77 = arith.constant 77 : index
    %77 = memref.load %arg1[%c77] : memref<155xf32, #tpu.memory_space<smem>>
    %c78 = arith.constant 78 : index
    %78 = memref.load %arg1[%c78] : memref<155xf32, #tpu.memory_space<smem>>
    %c79 = arith.constant 79 : index
    %79 = memref.load %arg1[%c79] : memref<155xf32, #tpu.memory_space<smem>>
    %c80 = arith.constant 80 : index
    %80 = memref.load %arg1[%c80] : memref<155xf32, #tpu.memory_space<smem>>
    %c81 = arith.constant 81 : index
    %81 = memref.load %arg1[%c81] : memref<155xf32, #tpu.memory_space<smem>>
    %c82 = arith.constant 82 : index
    %82 = memref.load %arg1[%c82] : memref<155xf32, #tpu.memory_space<smem>>
    %c83 = arith.constant 83 : index
    %83 = memref.load %arg1[%c83] : memref<155xf32, #tpu.memory_space<smem>>
    %c84 = arith.constant 84 : index
    %84 = memref.load %arg1[%c84] : memref<155xf32, #tpu.memory_space<smem>>
    %c85 = arith.constant 85 : index
    %85 = memref.load %arg1[%c85] : memref<155xf32, #tpu.memory_space<smem>>
    %c86 = arith.constant 86 : index
    %86 = memref.load %arg1[%c86] : memref<155xf32, #tpu.memory_space<smem>>
    %c87 = arith.constant 87 : index
    %87 = memref.load %arg1[%c87] : memref<155xf32, #tpu.memory_space<smem>>
    %c88 = arith.constant 88 : index
    %88 = memref.load %arg1[%c88] : memref<155xf32, #tpu.memory_space<smem>>
    %c89 = arith.constant 89 : index
    %89 = memref.load %arg1[%c89] : memref<155xf32, #tpu.memory_space<smem>>
    %c90 = arith.constant 90 : index
    %90 = memref.load %arg1[%c90] : memref<155xf32, #tpu.memory_space<smem>>
    %c91 = arith.constant 91 : index
    %91 = memref.load %arg1[%c91] : memref<155xf32, #tpu.memory_space<smem>>
    %c92 = arith.constant 92 : index
    %92 = memref.load %arg1[%c92] : memref<155xf32, #tpu.memory_space<smem>>
    %c93 = arith.constant 93 : index
    %93 = memref.load %arg1[%c93] : memref<155xf32, #tpu.memory_space<smem>>
    %c94 = arith.constant 94 : index
    %94 = memref.load %arg1[%c94] : memref<155xf32, #tpu.memory_space<smem>>
    %c95 = arith.constant 95 : index
    %95 = memref.load %arg1[%c95] : memref<155xf32, #tpu.memory_space<smem>>
    %c96 = arith.constant 96 : index
    %96 = memref.load %arg1[%c96] : memref<155xf32, #tpu.memory_space<smem>>
    %c97 = arith.constant 97 : index
    %97 = memref.load %arg1[%c97] : memref<155xf32, #tpu.memory_space<smem>>
    %c98 = arith.constant 98 : index
    %98 = memref.load %arg1[%c98] : memref<155xf32, #tpu.memory_space<smem>>
    %c99 = arith.constant 99 : index
    %99 = memref.load %arg1[%c99] : memref<155xf32, #tpu.memory_space<smem>>
    %c100 = arith.constant 100 : index
    %100 = memref.load %arg1[%c100] : memref<155xf32, #tpu.memory_space<smem>>
    %c101 = arith.constant 101 : index
    %101 = memref.load %arg1[%c101] : memref<155xf32, #tpu.memory_space<smem>>
    %c102 = arith.constant 102 : index
    %102 = memref.load %arg1[%c102] : memref<155xf32, #tpu.memory_space<smem>>
    %c103 = arith.constant 103 : index
    %103 = memref.load %arg1[%c103] : memref<155xf32, #tpu.memory_space<smem>>
    %c104 = arith.constant 104 : index
    %104 = memref.load %arg1[%c104] : memref<155xf32, #tpu.memory_space<smem>>
    %c105 = arith.constant 105 : index
    %105 = memref.load %arg1[%c105] : memref<155xf32, #tpu.memory_space<smem>>
    %c106 = arith.constant 106 : index
    %106 = memref.load %arg1[%c106] : memref<155xf32, #tpu.memory_space<smem>>
    %c107 = arith.constant 107 : index
    %107 = memref.load %arg1[%c107] : memref<155xf32, #tpu.memory_space<smem>>
    %c108 = arith.constant 108 : index
    %108 = memref.load %arg1[%c108] : memref<155xf32, #tpu.memory_space<smem>>
    %c109 = arith.constant 109 : index
    %109 = memref.load %arg1[%c109] : memref<155xf32, #tpu.memory_space<smem>>
    %c110 = arith.constant 110 : index
    %110 = memref.load %arg1[%c110] : memref<155xf32, #tpu.memory_space<smem>>
    %c111 = arith.constant 111 : index
    %111 = memref.load %arg1[%c111] : memref<155xf32, #tpu.memory_space<smem>>
    %c112 = arith.constant 112 : index
    %112 = memref.load %arg1[%c112] : memref<155xf32, #tpu.memory_space<smem>>
    %c113 = arith.constant 113 : index
    %113 = memref.load %arg1[%c113] : memref<155xf32, #tpu.memory_space<smem>>
    %c114 = arith.constant 114 : index
    %114 = memref.load %arg1[%c114] : memref<155xf32, #tpu.memory_space<smem>>
    %c115 = arith.constant 115 : index
    %115 = memref.load %arg1[%c115] : memref<155xf32, #tpu.memory_space<smem>>
    %c116 = arith.constant 116 : index
    %116 = memref.load %arg1[%c116] : memref<155xf32, #tpu.memory_space<smem>>
    %c117 = arith.constant 117 : index
    %117 = memref.load %arg1[%c117] : memref<155xf32, #tpu.memory_space<smem>>
    %c118 = arith.constant 118 : index
    %118 = memref.load %arg1[%c118] : memref<155xf32, #tpu.memory_space<smem>>
    %c119 = arith.constant 119 : index
    %119 = memref.load %arg1[%c119] : memref<155xf32, #tpu.memory_space<smem>>
    %c120 = arith.constant 120 : index
    %120 = memref.load %arg1[%c120] : memref<155xf32, #tpu.memory_space<smem>>
    %c121 = arith.constant 121 : index
    %121 = memref.load %arg1[%c121] : memref<155xf32, #tpu.memory_space<smem>>
    %c122 = arith.constant 122 : index
    %122 = memref.load %arg1[%c122] : memref<155xf32, #tpu.memory_space<smem>>
    %c123 = arith.constant 123 : index
    %123 = memref.load %arg1[%c123] : memref<155xf32, #tpu.memory_space<smem>>
    %c124 = arith.constant 124 : index
    %124 = memref.load %arg1[%c124] : memref<155xf32, #tpu.memory_space<smem>>
    %c125 = arith.constant 125 : index
    %125 = memref.load %arg1[%c125] : memref<155xf32, #tpu.memory_space<smem>>
    %c126 = arith.constant 126 : index
    %126 = memref.load %arg1[%c126] : memref<155xf32, #tpu.memory_space<smem>>
    %c127 = arith.constant 127 : index
    %127 = memref.load %arg1[%c127] : memref<155xf32, #tpu.memory_space<smem>>
    %c128 = arith.constant 128 : index
    %128 = memref.load %arg1[%c128] : memref<155xf32, #tpu.memory_space<smem>>
    %c129 = arith.constant 129 : index
    %129 = memref.load %arg1[%c129] : memref<155xf32, #tpu.memory_space<smem>>
    %c130 = arith.constant 130 : index
    %130 = memref.load %arg1[%c130] : memref<155xf32, #tpu.memory_space<smem>>
    %c131 = arith.constant 131 : index
    %131 = memref.load %arg1[%c131] : memref<155xf32, #tpu.memory_space<smem>>
    %c132 = arith.constant 132 : index
    %132 = memref.load %arg1[%c132] : memref<155xf32, #tpu.memory_space<smem>>
    %c133 = arith.constant 133 : index
    %133 = memref.load %arg1[%c133] : memref<155xf32, #tpu.memory_space<smem>>
    %c134 = arith.constant 134 : index
    %134 = memref.load %arg1[%c134] : memref<155xf32, #tpu.memory_space<smem>>
    %c135 = arith.constant 135 : index
    %135 = memref.load %arg1[%c135] : memref<155xf32, #tpu.memory_space<smem>>
    %c136 = arith.constant 136 : index
    %136 = memref.load %arg1[%c136] : memref<155xf32, #tpu.memory_space<smem>>
    %c137 = arith.constant 137 : index
    %137 = memref.load %arg1[%c137] : memref<155xf32, #tpu.memory_space<smem>>
    %c138 = arith.constant 138 : index
    %138 = memref.load %arg1[%c138] : memref<155xf32, #tpu.memory_space<smem>>
    %c139 = arith.constant 139 : index
    %139 = memref.load %arg1[%c139] : memref<155xf32, #tpu.memory_space<smem>>
    %c140 = arith.constant 140 : index
    %140 = memref.load %arg1[%c140] : memref<155xf32, #tpu.memory_space<smem>>
    %c141 = arith.constant 141 : index
    %141 = memref.load %arg1[%c141] : memref<155xf32, #tpu.memory_space<smem>>
    %c142 = arith.constant 142 : index
    %142 = memref.load %arg1[%c142] : memref<155xf32, #tpu.memory_space<smem>>
    %c143 = arith.constant 143 : index
    %143 = memref.load %arg1[%c143] : memref<155xf32, #tpu.memory_space<smem>>
    %c144 = arith.constant 144 : index
    %144 = memref.load %arg1[%c144] : memref<155xf32, #tpu.memory_space<smem>>
    %c145 = arith.constant 145 : index
    %145 = memref.load %arg1[%c145] : memref<155xf32, #tpu.memory_space<smem>>
    %c146 = arith.constant 146 : index
    %146 = memref.load %arg1[%c146] : memref<155xf32, #tpu.memory_space<smem>>
    %c147 = arith.constant 147 : index
    %147 = memref.load %arg1[%c147] : memref<155xf32, #tpu.memory_space<smem>>
    %c148 = arith.constant 148 : index
    %148 = memref.load %arg1[%c148] : memref<155xf32, #tpu.memory_space<smem>>
    %c149 = arith.constant 149 : index
    %149 = memref.load %arg1[%c149] : memref<155xf32, #tpu.memory_space<smem>>
    %c150 = arith.constant 150 : index
    %150 = memref.load %arg1[%c150] : memref<155xf32, #tpu.memory_space<smem>>
    %c151 = arith.constant 151 : index
    %151 = memref.load %arg1[%c151] : memref<155xf32, #tpu.memory_space<smem>>
    %c152 = arith.constant 152 : index
    %152 = memref.load %arg1[%c152] : memref<155xf32, #tpu.memory_space<smem>>
    %c153 = arith.constant 153 : index
    %153 = memref.load %arg1[%c153] : memref<155xf32, #tpu.memory_space<smem>>
    %c154 = arith.constant 154 : index
    %154 = memref.load %arg1[%c154] : memref<155xf32, #tpu.memory_space<smem>>
    %c0_i32 = arith.constant 0 : i32
    %c1_i32 = arith.constant 1 : i32
    %155 = arith.muli %c0_i32, %c1_i32 : i32
    %c0_i32_0 = arith.constant 0 : i32
    %156 = arith.addi %c0_i32_0, %155 : i32
    %c8_i32 = arith.constant 8 : i32
    %157 = arith.muli %156, %c8_i32 : i32
    %158 = tpu.assume_multiple %157, 8 : i32
    %c1_1 = arith.constant 1 : index
    %159 = arith.index_cast %158 : i32 to index
    %c0_2 = arith.constant 0 : index
    %160 = vector.load %arg2[%c1_1, %159, %c0_2] : memref<2x8x128xf32, #tpu.memory_space<vmem>>, vector<1x8x128xf32>
    %161 = vector.shape_cast %160 : vector<1x8x128xf32> to vector<8x128xf32>
    %c0_3 = arith.constant 0 : index
    %162 = arith.index_cast %158 : i32 to index
    %c0_4 = arith.constant 0 : index
    %163 = vector.load %arg2[%c0_3, %162, %c0_4] : memref<2x8x128xf32, #tpu.memory_space<vmem>>, vector<1x8x128xf32>
    %164 = vector.shape_cast %163 : vector<1x8x128xf32> to vector<8x128xf32>
    %165 = vector.broadcast %0 : f32 to vector<8x128xf32>
    %166 = arith.mulf %161, %165 : vector<8x128xf32>
    %167 = vector.broadcast %10 : f32 to vector<8x128xf32>
    %168 = arith.addf %166, %167 : vector<8x128xf32>
    %cst = arith.constant 0.000000e+00 : f32
    %169 = vector.broadcast %cst : f32 to vector<8x128xf32>
    %170 = arith.maximumf %168, %169 : vector<8x128xf32>
    %171 = vector.broadcast %1 : f32 to vector<8x128xf32>
    %172 = arith.mulf %161, %171 : vector<8x128xf32>
    %173 = vector.broadcast %11 : f32 to vector<8x128xf32>
    %174 = arith.addf %172, %173 : vector<8x128xf32>
    %cst_5 = arith.constant 0.000000e+00 : f32
    %175 = vector.broadcast %cst_5 : f32 to vector<8x128xf32>
    %176 = arith.maximumf %174, %175 : vector<8x128xf32>
    %177 = vector.broadcast %2 : f32 to vector<8x128xf32>
    %178 = arith.mulf %161, %177 : vector<8x128xf32>
    %179 = vector.broadcast %12 : f32 to vector<8x128xf32>
    %180 = arith.addf %178, %179 : vector<8x128xf32>
    %cst_6 = arith.constant 0.000000e+00 : f32
    %181 = vector.broadcast %cst_6 : f32 to vector<8x128xf32>
    %182 = arith.maximumf %180, %181 : vector<8x128xf32>
    %183 = vector.broadcast %3 : f32 to vector<8x128xf32>
    %184 = arith.mulf %161, %183 : vector<8x128xf32>
    %185 = vector.broadcast %13 : f32 to vector<8x128xf32>
    %186 = arith.addf %184, %185 : vector<8x128xf32>
    %cst_7 = arith.constant 0.000000e+00 : f32
    %187 = vector.broadcast %cst_7 : f32 to vector<8x128xf32>
    %188 = arith.maximumf %186, %187 : vector<8x128xf32>
    %189 = vector.broadcast %4 : f32 to vector<8x128xf32>
    %190 = arith.mulf %161, %189 : vector<8x128xf32>
    %191 = vector.broadcast %14 : f32 to vector<8x128xf32>
    %192 = arith.addf %190, %191 : vector<8x128xf32>
    %cst_8 = arith.constant 0.000000e+00 : f32
    %193 = vector.broadcast %cst_8 : f32 to vector<8x128xf32>
    %194 = arith.maximumf %192, %193 : vector<8x128xf32>
    %195 = vector.broadcast %5 : f32 to vector<8x128xf32>
    %196 = arith.mulf %161, %195 : vector<8x128xf32>
    %197 = vector.broadcast %15 : f32 to vector<8x128xf32>
    %198 = arith.addf %196, %197 : vector<8x128xf32>
    %cst_9 = arith.constant 0.000000e+00 : f32
    %199 = vector.broadcast %cst_9 : f32 to vector<8x128xf32>
    %200 = arith.maximumf %198, %199 : vector<8x128xf32>
    %201 = vector.broadcast %6 : f32 to vector<8x128xf32>
    %202 = arith.mulf %161, %201 : vector<8x128xf32>
    %203 = vector.broadcast %16 : f32 to vector<8x128xf32>
    %204 = arith.addf %202, %203 : vector<8x128xf32>
    %cst_10 = arith.constant 0.000000e+00 : f32
    %205 = vector.broadcast %cst_10 : f32 to vector<8x128xf32>
    %206 = arith.maximumf %204, %205 : vector<8x128xf32>
    %207 = vector.broadcast %7 : f32 to vector<8x128xf32>
    %208 = arith.mulf %161, %207 : vector<8x128xf32>
    %209 = vector.broadcast %17 : f32 to vector<8x128xf32>
    %210 = arith.addf %208, %209 : vector<8x128xf32>
    %cst_11 = arith.constant 0.000000e+00 : f32
    %211 = vector.broadcast %cst_11 : f32 to vector<8x128xf32>
    %212 = arith.maximumf %210, %211 : vector<8x128xf32>
    %213 = vector.broadcast %8 : f32 to vector<8x128xf32>
    %214 = arith.mulf %161, %213 : vector<8x128xf32>
    %215 = vector.broadcast %18 : f32 to vector<8x128xf32>
    %216 = arith.addf %214, %215 : vector<8x128xf32>
    %cst_12 = arith.constant 0.000000e+00 : f32
    %217 = vector.broadcast %cst_12 : f32 to vector<8x128xf32>
    %218 = arith.maximumf %216, %217 : vector<8x128xf32>
    %219 = vector.broadcast %9 : f32 to vector<8x128xf32>
    %220 = arith.mulf %161, %219 : vector<8x128xf32>
    %221 = vector.broadcast %19 : f32 to vector<8x128xf32>
    %222 = arith.addf %220, %221 : vector<8x128xf32>
    %cst_13 = arith.constant 0.000000e+00 : f32
    %223 = vector.broadcast %cst_13 : f32 to vector<8x128xf32>
    %224 = arith.maximumf %222, %223 : vector<8x128xf32>
    %225 = vector.broadcast %20 : f32 to vector<8x128xf32>
    %226 = arith.mulf %170, %225 : vector<8x128xf32>
    %227 = vector.broadcast %30 : f32 to vector<8x128xf32>
    %228 = arith.mulf %176, %227 : vector<8x128xf32>
    %229 = arith.addf %226, %228 : vector<8x128xf32>
    %230 = vector.broadcast %40 : f32 to vector<8x128xf32>
    %231 = arith.mulf %182, %230 : vector<8x128xf32>
    %232 = arith.addf %229, %231 : vector<8x128xf32>
    %233 = vector.broadcast %50 : f32 to vector<8x128xf32>
    %234 = arith.mulf %188, %233 : vector<8x128xf32>
    %235 = arith.addf %232, %234 : vector<8x128xf32>
    %236 = vector.broadcast %60 : f32 to vector<8x128xf32>
    %237 = arith.mulf %194, %236 : vector<8x128xf32>
    %238 = arith.addf %235, %237 : vector<8x128xf32>
    %239 = vector.broadcast %70 : f32 to vector<8x128xf32>
    %240 = arith.mulf %200, %239 : vector<8x128xf32>
    %241 = arith.addf %238, %240 : vector<8x128xf32>
    %242 = vector.broadcast %80 : f32 to vector<8x128xf32>
    %243 = arith.mulf %206, %242 : vector<8x128xf32>
    %244 = arith.addf %241, %243 : vector<8x128xf32>
    %245 = vector.broadcast %90 : f32 to vector<8x128xf32>
    %246 = arith.mulf %212, %245 : vector<8x128xf32>
    %247 = arith.addf %244, %246 : vector<8x128xf32>
    %248 = vector.broadcast %100 : f32 to vector<8x128xf32>
    %249 = arith.mulf %218, %248 : vector<8x128xf32>
    %250 = arith.addf %247, %249 : vector<8x128xf32>
    %251 = vector.broadcast %110 : f32 to vector<8x128xf32>
    %252 = arith.mulf %224, %251 : vector<8x128xf32>
    %253 = arith.addf %250, %252 : vector<8x128xf32>
    %254 = vector.broadcast %120 : f32 to vector<8x128xf32>
    %255 = arith.addf %253, %254 : vector<8x128xf32>
    %cst_14 = arith.constant 0.000000e+00 : f32
    %256 = vector.broadcast %cst_14 : f32 to vector<8x128xf32>
    %257 = arith.maximumf %255, %256 : vector<8x128xf32>
    %258 = vector.broadcast %21 : f32 to vector<8x128xf32>
    %259 = arith.mulf %170, %258 : vector<8x128xf32>
    %260 = vector.broadcast %31 : f32 to vector<8x128xf32>
    %261 = arith.mulf %176, %260 : vector<8x128xf32>
    %262 = arith.addf %259, %261 : vector<8x128xf32>
    %263 = vector.broadcast %41 : f32 to vector<8x128xf32>
    %264 = arith.mulf %182, %263 : vector<8x128xf32>
    %265 = arith.addf %262, %264 : vector<8x128xf32>
    %266 = vector.broadcast %51 : f32 to vector<8x128xf32>
    %267 = arith.mulf %188, %266 : vector<8x128xf32>
    %268 = arith.addf %265, %267 : vector<8x128xf32>
    %269 = vector.broadcast %61 : f32 to vector<8x128xf32>
    %270 = arith.mulf %194, %269 : vector<8x128xf32>
    %271 = arith.addf %268, %270 : vector<8x128xf32>
    %272 = vector.broadcast %71 : f32 to vector<8x128xf32>
    %273 = arith.mulf %200, %272 : vector<8x128xf32>
    %274 = arith.addf %271, %273 : vector<8x128xf32>
    %275 = vector.broadcast %81 : f32 to vector<8x128xf32>
    %276 = arith.mulf %206, %275 : vector<8x128xf32>
    %277 = arith.addf %274, %276 : vector<8x128xf32>
    %278 = vector.broadcast %91 : f32 to vector<8x128xf32>
    %279 = arith.mulf %212, %278 : vector<8x128xf32>
    %280 = arith.addf %277, %279 : vector<8x128xf32>
    %281 = vector.broadcast %101 : f32 to vector<8x128xf32>
    %282 = arith.mulf %218, %281 : vector<8x128xf32>
    %283 = arith.addf %280, %282 : vector<8x128xf32>
    %284 = vector.broadcast %111 : f32 to vector<8x128xf32>
    %285 = arith.mulf %224, %284 : vector<8x128xf32>
    %286 = arith.addf %283, %285 : vector<8x128xf32>
    %287 = vector.broadcast %121 : f32 to vector<8x128xf32>
    %288 = arith.addf %286, %287 : vector<8x128xf32>
    %cst_15 = arith.constant 0.000000e+00 : f32
    %289 = vector.broadcast %cst_15 : f32 to vector<8x128xf32>
    %290 = arith.maximumf %288, %289 : vector<8x128xf32>
    %291 = vector.broadcast %22 : f32 to vector<8x128xf32>
    %292 = arith.mulf %170, %291 : vector<8x128xf32>
    %293 = vector.broadcast %32 : f32 to vector<8x128xf32>
    %294 = arith.mulf %176, %293 : vector<8x128xf32>
    %295 = arith.addf %292, %294 : vector<8x128xf32>
    %296 = vector.broadcast %42 : f32 to vector<8x128xf32>
    %297 = arith.mulf %182, %296 : vector<8x128xf32>
    %298 = arith.addf %295, %297 : vector<8x128xf32>
    %299 = vector.broadcast %52 : f32 to vector<8x128xf32>
    %300 = arith.mulf %188, %299 : vector<8x128xf32>
    %301 = arith.addf %298, %300 : vector<8x128xf32>
    %302 = vector.broadcast %62 : f32 to vector<8x128xf32>
    %303 = arith.mulf %194, %302 : vector<8x128xf32>
    %304 = arith.addf %301, %303 : vector<8x128xf32>
    %305 = vector.broadcast %72 : f32 to vector<8x128xf32>
    %306 = arith.mulf %200, %305 : vector<8x128xf32>
    %307 = arith.addf %304, %306 : vector<8x128xf32>
    %308 = vector.broadcast %82 : f32 to vector<8x128xf32>
    %309 = arith.mulf %206, %308 : vector<8x128xf32>
    %310 = arith.addf %307, %309 : vector<8x128xf32>
    %311 = vector.broadcast %92 : f32 to vector<8x128xf32>
    %312 = arith.mulf %212, %311 : vector<8x128xf32>
    %313 = arith.addf %310, %312 : vector<8x128xf32>
    %314 = vector.broadcast %102 : f32 to vector<8x128xf32>
    %315 = arith.mulf %218, %314 : vector<8x128xf32>
    %316 = arith.addf %313, %315 : vector<8x128xf32>
    %317 = vector.broadcast %112 : f32 to vector<8x128xf32>
    %318 = arith.mulf %224, %317 : vector<8x128xf32>
    %319 = arith.addf %316, %318 : vector<8x128xf32>
    %320 = vector.broadcast %122 : f32 to vector<8x128xf32>
    %321 = arith.addf %319, %320 : vector<8x128xf32>
    %cst_16 = arith.constant 0.000000e+00 : f32
    %322 = vector.broadcast %cst_16 : f32 to vector<8x128xf32>
    %323 = arith.maximumf %321, %322 : vector<8x128xf32>
    %324 = vector.broadcast %23 : f32 to vector<8x128xf32>
    %325 = arith.mulf %170, %324 : vector<8x128xf32>
    %326 = vector.broadcast %33 : f32 to vector<8x128xf32>
    %327 = arith.mulf %176, %326 : vector<8x128xf32>
    %328 = arith.addf %325, %327 : vector<8x128xf32>
    %329 = vector.broadcast %43 : f32 to vector<8x128xf32>
    %330 = arith.mulf %182, %329 : vector<8x128xf32>
    %331 = arith.addf %328, %330 : vector<8x128xf32>
    %332 = vector.broadcast %53 : f32 to vector<8x128xf32>
    %333 = arith.mulf %188, %332 : vector<8x128xf32>
    %334 = arith.addf %331, %333 : vector<8x128xf32>
    %335 = vector.broadcast %63 : f32 to vector<8x128xf32>
    %336 = arith.mulf %194, %335 : vector<8x128xf32>
    %337 = arith.addf %334, %336 : vector<8x128xf32>
    %338 = vector.broadcast %73 : f32 to vector<8x128xf32>
    %339 = arith.mulf %200, %338 : vector<8x128xf32>
    %340 = arith.addf %337, %339 : vector<8x128xf32>
    %341 = vector.broadcast %83 : f32 to vector<8x128xf32>
    %342 = arith.mulf %206, %341 : vector<8x128xf32>
    %343 = arith.addf %340, %342 : vector<8x128xf32>
    %344 = vector.broadcast %93 : f32 to vector<8x128xf32>
    %345 = arith.mulf %212, %344 : vector<8x128xf32>
    %346 = arith.addf %343, %345 : vector<8x128xf32>
    %347 = vector.broadcast %103 : f32 to vector<8x128xf32>
    %348 = arith.mulf %218, %347 : vector<8x128xf32>
    %349 = arith.addf %346, %348 : vector<8x128xf32>
    %350 = vector.broadcast %113 : f32 to vector<8x128xf32>
    %351 = arith.mulf %224, %350 : vector<8x128xf32>
    %352 = arith.addf %349, %351 : vector<8x128xf32>
    %353 = vector.broadcast %123 : f32 to vector<8x128xf32>
    %354 = arith.addf %352, %353 : vector<8x128xf32>
    %cst_17 = arith.constant 0.000000e+00 : f32
    %355 = vector.broadcast %cst_17 : f32 to vector<8x128xf32>
    %356 = arith.maximumf %354, %355 : vector<8x128xf32>
    %357 = vector.broadcast %24 : f32 to vector<8x128xf32>
    %358 = arith.mulf %170, %357 : vector<8x128xf32>
    %359 = vector.broadcast %34 : f32 to vector<8x128xf32>
    %360 = arith.mulf %176, %359 : vector<8x128xf32>
    %361 = arith.addf %358, %360 : vector<8x128xf32>
    %362 = vector.broadcast %44 : f32 to vector<8x128xf32>
    %363 = arith.mulf %182, %362 : vector<8x128xf32>
    %364 = arith.addf %361, %363 : vector<8x128xf32>
    %365 = vector.broadcast %54 : f32 to vector<8x128xf32>
    %366 = arith.mulf %188, %365 : vector<8x128xf32>
    %367 = arith.addf %364, %366 : vector<8x128xf32>
    %368 = vector.broadcast %64 : f32 to vector<8x128xf32>
    %369 = arith.mulf %194, %368 : vector<8x128xf32>
    %370 = arith.addf %367, %369 : vector<8x128xf32>
    %371 = vector.broadcast %74 : f32 to vector<8x128xf32>
    %372 = arith.mulf %200, %371 : vector<8x128xf32>
    %373 = arith.addf %370, %372 : vector<8x128xf32>
    %374 = vector.broadcast %84 : f32 to vector<8x128xf32>
    %375 = arith.mulf %206, %374 : vector<8x128xf32>
    %376 = arith.addf %373, %375 : vector<8x128xf32>
    %377 = vector.broadcast %94 : f32 to vector<8x128xf32>
    %378 = arith.mulf %212, %377 : vector<8x128xf32>
    %379 = arith.addf %376, %378 : vector<8x128xf32>
    %380 = vector.broadcast %104 : f32 to vector<8x128xf32>
    %381 = arith.mulf %218, %380 : vector<8x128xf32>
    %382 = arith.addf %379, %381 : vector<8x128xf32>
    %383 = vector.broadcast %114 : f32 to vector<8x128xf32>
    %384 = arith.mulf %224, %383 : vector<8x128xf32>
    %385 = arith.addf %382, %384 : vector<8x128xf32>
    %386 = vector.broadcast %124 : f32 to vector<8x128xf32>
    %387 = arith.addf %385, %386 : vector<8x128xf32>
    %cst_18 = arith.constant 0.000000e+00 : f32
    %388 = vector.broadcast %cst_18 : f32 to vector<8x128xf32>
    %389 = arith.maximumf %387, %388 : vector<8x128xf32>
    %390 = vector.broadcast %25 : f32 to vector<8x128xf32>
    %391 = arith.mulf %170, %390 : vector<8x128xf32>
    %392 = vector.broadcast %35 : f32 to vector<8x128xf32>
    %393 = arith.mulf %176, %392 : vector<8x128xf32>
    %394 = arith.addf %391, %393 : vector<8x128xf32>
    %395 = vector.broadcast %45 : f32 to vector<8x128xf32>
    %396 = arith.mulf %182, %395 : vector<8x128xf32>
    %397 = arith.addf %394, %396 : vector<8x128xf32>
    %398 = vector.broadcast %55 : f32 to vector<8x128xf32>
    %399 = arith.mulf %188, %398 : vector<8x128xf32>
    %400 = arith.addf %397, %399 : vector<8x128xf32>
    %401 = vector.broadcast %65 : f32 to vector<8x128xf32>
    %402 = arith.mulf %194, %401 : vector<8x128xf32>
    %403 = arith.addf %400, %402 : vector<8x128xf32>
    %404 = vector.broadcast %75 : f32 to vector<8x128xf32>
    %405 = arith.mulf %200, %404 : vector<8x128xf32>
    %406 = arith.addf %403, %405 : vector<8x128xf32>
    %407 = vector.broadcast %85 : f32 to vector<8x128xf32>
    %408 = arith.mulf %206, %407 : vector<8x128xf32>
    %409 = arith.addf %406, %408 : vector<8x128xf32>
    %410 = vector.broadcast %95 : f32 to vector<8x128xf32>
    %411 = arith.mulf %212, %410 : vector<8x128xf32>
    %412 = arith.addf %409, %411 : vector<8x128xf32>
    %413 = vector.broadcast %105 : f32 to vector<8x128xf32>
    %414 = arith.mulf %218, %413 : vector<8x128xf32>
    %415 = arith.addf %412, %414 : vector<8x128xf32>
    %416 = vector.broadcast %115 : f32 to vector<8x128xf32>
    %417 = arith.mulf %224, %416 : vector<8x128xf32>
    %418 = arith.addf %415, %417 : vector<8x128xf32>
    %419 = vector.broadcast %125 : f32 to vector<8x128xf32>
    %420 = arith.addf %418, %419 : vector<8x128xf32>
    %cst_19 = arith.constant 0.000000e+00 : f32
    %421 = vector.broadcast %cst_19 : f32 to vector<8x128xf32>
    %422 = arith.maximumf %420, %421 : vector<8x128xf32>
    %423 = vector.broadcast %26 : f32 to vector<8x128xf32>
    %424 = arith.mulf %170, %423 : vector<8x128xf32>
    %425 = vector.broadcast %36 : f32 to vector<8x128xf32>
    %426 = arith.mulf %176, %425 : vector<8x128xf32>
    %427 = arith.addf %424, %426 : vector<8x128xf32>
    %428 = vector.broadcast %46 : f32 to vector<8x128xf32>
    %429 = arith.mulf %182, %428 : vector<8x128xf32>
    %430 = arith.addf %427, %429 : vector<8x128xf32>
    %431 = vector.broadcast %56 : f32 to vector<8x128xf32>
    %432 = arith.mulf %188, %431 : vector<8x128xf32>
    %433 = arith.addf %430, %432 : vector<8x128xf32>
    %434 = vector.broadcast %66 : f32 to vector<8x128xf32>
    %435 = arith.mulf %194, %434 : vector<8x128xf32>
    %436 = arith.addf %433, %435 : vector<8x128xf32>
    %437 = vector.broadcast %76 : f32 to vector<8x128xf32>
    %438 = arith.mulf %200, %437 : vector<8x128xf32>
    %439 = arith.addf %436, %438 : vector<8x128xf32>
    %440 = vector.broadcast %86 : f32 to vector<8x128xf32>
    %441 = arith.mulf %206, %440 : vector<8x128xf32>
    %442 = arith.addf %439, %441 : vector<8x128xf32>
    %443 = vector.broadcast %96 : f32 to vector<8x128xf32>
    %444 = arith.mulf %212, %443 : vector<8x128xf32>
    %445 = arith.addf %442, %444 : vector<8x128xf32>
    %446 = vector.broadcast %106 : f32 to vector<8x128xf32>
    %447 = arith.mulf %218, %446 : vector<8x128xf32>
    %448 = arith.addf %445, %447 : vector<8x128xf32>
    %449 = vector.broadcast %116 : f32 to vector<8x128xf32>
    %450 = arith.mulf %224, %449 : vector<8x128xf32>
    %451 = arith.addf %448, %450 : vector<8x128xf32>
    %452 = vector.broadcast %126 : f32 to vector<8x128xf32>
    %453 = arith.addf %451, %452 : vector<8x128xf32>
    %cst_20 = arith.constant 0.000000e+00 : f32
    %454 = vector.broadcast %cst_20 : f32 to vector<8x128xf32>
    %455 = arith.maximumf %453, %454 : vector<8x128xf32>
    %456 = vector.broadcast %27 : f32 to vector<8x128xf32>
    %457 = arith.mulf %170, %456 : vector<8x128xf32>
    %458 = vector.broadcast %37 : f32 to vector<8x128xf32>
    %459 = arith.mulf %176, %458 : vector<8x128xf32>
    %460 = arith.addf %457, %459 : vector<8x128xf32>
    %461 = vector.broadcast %47 : f32 to vector<8x128xf32>
    %462 = arith.mulf %182, %461 : vector<8x128xf32>
    %463 = arith.addf %460, %462 : vector<8x128xf32>
    %464 = vector.broadcast %57 : f32 to vector<8x128xf32>
    %465 = arith.mulf %188, %464 : vector<8x128xf32>
    %466 = arith.addf %463, %465 : vector<8x128xf32>
    %467 = vector.broadcast %67 : f32 to vector<8x128xf32>
    %468 = arith.mulf %194, %467 : vector<8x128xf32>
    %469 = arith.addf %466, %468 : vector<8x128xf32>
    %470 = vector.broadcast %77 : f32 to vector<8x128xf32>
    %471 = arith.mulf %200, %470 : vector<8x128xf32>
    %472 = arith.addf %469, %471 : vector<8x128xf32>
    %473 = vector.broadcast %87 : f32 to vector<8x128xf32>
    %474 = arith.mulf %206, %473 : vector<8x128xf32>
    %475 = arith.addf %472, %474 : vector<8x128xf32>
    %476 = vector.broadcast %97 : f32 to vector<8x128xf32>
    %477 = arith.mulf %212, %476 : vector<8x128xf32>
    %478 = arith.addf %475, %477 : vector<8x128xf32>
    %479 = vector.broadcast %107 : f32 to vector<8x128xf32>
    %480 = arith.mulf %218, %479 : vector<8x128xf32>
    %481 = arith.addf %478, %480 : vector<8x128xf32>
    %482 = vector.broadcast %117 : f32 to vector<8x128xf32>
    %483 = arith.mulf %224, %482 : vector<8x128xf32>
    %484 = arith.addf %481, %483 : vector<8x128xf32>
    %485 = vector.broadcast %127 : f32 to vector<8x128xf32>
    %486 = arith.addf %484, %485 : vector<8x128xf32>
    %cst_21 = arith.constant 0.000000e+00 : f32
    %487 = vector.broadcast %cst_21 : f32 to vector<8x128xf32>
    %488 = arith.maximumf %486, %487 : vector<8x128xf32>
    %489 = vector.broadcast %28 : f32 to vector<8x128xf32>
    %490 = arith.mulf %170, %489 : vector<8x128xf32>
    %491 = vector.broadcast %38 : f32 to vector<8x128xf32>
    %492 = arith.mulf %176, %491 : vector<8x128xf32>
    %493 = arith.addf %490, %492 : vector<8x128xf32>
    %494 = vector.broadcast %48 : f32 to vector<8x128xf32>
    %495 = arith.mulf %182, %494 : vector<8x128xf32>
    %496 = arith.addf %493, %495 : vector<8x128xf32>
    %497 = vector.broadcast %58 : f32 to vector<8x128xf32>
    %498 = arith.mulf %188, %497 : vector<8x128xf32>
    %499 = arith.addf %496, %498 : vector<8x128xf32>
    %500 = vector.broadcast %68 : f32 to vector<8x128xf32>
    %501 = arith.mulf %194, %500 : vector<8x128xf32>
    %502 = arith.addf %499, %501 : vector<8x128xf32>
    %503 = vector.broadcast %78 : f32 to vector<8x128xf32>
    %504 = arith.mulf %200, %503 : vector<8x128xf32>
    %505 = arith.addf %502, %504 : vector<8x128xf32>
    %506 = vector.broadcast %88 : f32 to vector<8x128xf32>
    %507 = arith.mulf %206, %506 : vector<8x128xf32>
    %508 = arith.addf %505, %507 : vector<8x128xf32>
    %509 = vector.broadcast %98 : f32 to vector<8x128xf32>
    %510 = arith.mulf %212, %509 : vector<8x128xf32>
    %511 = arith.addf %508, %510 : vector<8x128xf32>
    %512 = vector.broadcast %108 : f32 to vector<8x128xf32>
    %513 = arith.mulf %218, %512 : vector<8x128xf32>
    %514 = arith.addf %511, %513 : vector<8x128xf32>
    %515 = vector.broadcast %118 : f32 to vector<8x128xf32>
    %516 = arith.mulf %224, %515 : vector<8x128xf32>
    %517 = arith.addf %514, %516 : vector<8x128xf32>
    %518 = vector.broadcast %128 : f32 to vector<8x128xf32>
    %519 = arith.addf %517, %518 : vector<8x128xf32>
    %cst_22 = arith.constant 0.000000e+00 : f32
    %520 = vector.broadcast %cst_22 : f32 to vector<8x128xf32>
    %521 = arith.maximumf %519, %520 : vector<8x128xf32>
    %522 = vector.broadcast %29 : f32 to vector<8x128xf32>
    %523 = arith.mulf %170, %522 : vector<8x128xf32>
    %524 = vector.broadcast %39 : f32 to vector<8x128xf32>
    %525 = arith.mulf %176, %524 : vector<8x128xf32>
    %526 = arith.addf %523, %525 : vector<8x128xf32>
    %527 = vector.broadcast %49 : f32 to vector<8x128xf32>
    %528 = arith.mulf %182, %527 : vector<8x128xf32>
    %529 = arith.addf %526, %528 : vector<8x128xf32>
    %530 = vector.broadcast %59 : f32 to vector<8x128xf32>
    %531 = arith.mulf %188, %530 : vector<8x128xf32>
    %532 = arith.addf %529, %531 : vector<8x128xf32>
    %533 = vector.broadcast %69 : f32 to vector<8x128xf32>
    %534 = arith.mulf %194, %533 : vector<8x128xf32>
    %535 = arith.addf %532, %534 : vector<8x128xf32>
    %536 = vector.broadcast %79 : f32 to vector<8x128xf32>
    %537 = arith.mulf %200, %536 : vector<8x128xf32>
    %538 = arith.addf %535, %537 : vector<8x128xf32>
    %539 = vector.broadcast %89 : f32 to vector<8x128xf32>
    %540 = arith.mulf %206, %539 : vector<8x128xf32>
    %541 = arith.addf %538, %540 : vector<8x128xf32>
    %542 = vector.broadcast %99 : f32 to vector<8x128xf32>
    %543 = arith.mulf %212, %542 : vector<8x128xf32>
    %544 = arith.addf %541, %543 : vector<8x128xf32>
    %545 = vector.broadcast %109 : f32 to vector<8x128xf32>
    %546 = arith.mulf %218, %545 : vector<8x128xf32>
    %547 = arith.addf %544, %546 : vector<8x128xf32>
    %548 = vector.broadcast %119 : f32 to vector<8x128xf32>
    %549 = arith.mulf %224, %548 : vector<8x128xf32>
    %550 = arith.addf %547, %549 : vector<8x128xf32>
    %551 = vector.broadcast %129 : f32 to vector<8x128xf32>
    %552 = arith.addf %550, %551 : vector<8x128xf32>
    %cst_23 = arith.constant 0.000000e+00 : f32
    %553 = vector.broadcast %cst_23 : f32 to vector<8x128xf32>
    %554 = arith.maximumf %552, %553 : vector<8x128xf32>
    %555 = vector.broadcast %130 : f32 to vector<8x128xf32>
    %556 = arith.mulf %257, %555 : vector<8x128xf32>
    %557 = vector.broadcast %140 : f32 to vector<8x128xf32>
    %558 = arith.mulf %257, %557 : vector<8x128xf32>
    %559 = vector.broadcast %131 : f32 to vector<8x128xf32>
    %560 = arith.mulf %290, %559 : vector<8x128xf32>
    %561 = arith.addf %556, %560 : vector<8x128xf32>
    %562 = vector.broadcast %141 : f32 to vector<8x128xf32>
    %563 = arith.mulf %290, %562 : vector<8x128xf32>
    %564 = arith.addf %558, %563 : vector<8x128xf32>
    %565 = vector.broadcast %132 : f32 to vector<8x128xf32>
    %566 = arith.mulf %323, %565 : vector<8x128xf32>
    %567 = arith.addf %561, %566 : vector<8x128xf32>
    %568 = vector.broadcast %142 : f32 to vector<8x128xf32>
    %569 = arith.mulf %323, %568 : vector<8x128xf32>
    %570 = arith.addf %564, %569 : vector<8x128xf32>
    %571 = vector.broadcast %133 : f32 to vector<8x128xf32>
    %572 = arith.mulf %356, %571 : vector<8x128xf32>
    %573 = arith.addf %567, %572 : vector<8x128xf32>
    %574 = vector.broadcast %143 : f32 to vector<8x128xf32>
    %575 = arith.mulf %356, %574 : vector<8x128xf32>
    %576 = arith.addf %570, %575 : vector<8x128xf32>
    %577 = vector.broadcast %134 : f32 to vector<8x128xf32>
    %578 = arith.mulf %389, %577 : vector<8x128xf32>
    %579 = arith.addf %573, %578 : vector<8x128xf32>
    %580 = vector.broadcast %144 : f32 to vector<8x128xf32>
    %581 = arith.mulf %389, %580 : vector<8x128xf32>
    %582 = arith.addf %576, %581 : vector<8x128xf32>
    %583 = vector.broadcast %135 : f32 to vector<8x128xf32>
    %584 = arith.mulf %422, %583 : vector<8x128xf32>
    %585 = arith.addf %579, %584 : vector<8x128xf32>
    %586 = vector.broadcast %145 : f32 to vector<8x128xf32>
    %587 = arith.mulf %422, %586 : vector<8x128xf32>
    %588 = arith.addf %582, %587 : vector<8x128xf32>
    %589 = vector.broadcast %136 : f32 to vector<8x128xf32>
    %590 = arith.mulf %455, %589 : vector<8x128xf32>
    %591 = arith.addf %585, %590 : vector<8x128xf32>
    %592 = vector.broadcast %146 : f32 to vector<8x128xf32>
    %593 = arith.mulf %455, %592 : vector<8x128xf32>
    %594 = arith.addf %588, %593 : vector<8x128xf32>
    %595 = vector.broadcast %137 : f32 to vector<8x128xf32>
    %596 = arith.mulf %488, %595 : vector<8x128xf32>
    %597 = arith.addf %591, %596 : vector<8x128xf32>
    %598 = vector.broadcast %147 : f32 to vector<8x128xf32>
    %599 = arith.mulf %488, %598 : vector<8x128xf32>
    %600 = arith.addf %594, %599 : vector<8x128xf32>
    %601 = vector.broadcast %138 : f32 to vector<8x128xf32>
    %602 = arith.mulf %521, %601 : vector<8x128xf32>
    %603 = arith.addf %597, %602 : vector<8x128xf32>
    %604 = vector.broadcast %148 : f32 to vector<8x128xf32>
    %605 = arith.mulf %521, %604 : vector<8x128xf32>
    %606 = arith.addf %600, %605 : vector<8x128xf32>
    %607 = vector.broadcast %139 : f32 to vector<8x128xf32>
    %608 = arith.mulf %554, %607 : vector<8x128xf32>
    %609 = arith.addf %603, %608 : vector<8x128xf32>
    %610 = vector.broadcast %149 : f32 to vector<8x128xf32>
    %611 = arith.mulf %554, %610 : vector<8x128xf32>
    %612 = arith.addf %606, %611 : vector<8x128xf32>
    %613 = vector.broadcast %150 : f32 to vector<8x128xf32>
    %614 = arith.addf %609, %613 : vector<8x128xf32>
    %615 = vector.broadcast %151 : f32 to vector<8x128xf32>
    %616 = arith.addf %612, %615 : vector<8x128xf32>
    %617 = vector.broadcast %152 : f32 to vector<8x128xf32>
    %618 = arith.mulf %161, %617 : vector<8x128xf32>
    %619 = vector.broadcast %153 : f32 to vector<8x128xf32>
    %620 = arith.subf %618, %619 : vector<8x128xf32>
    %621 = arith.subf %164, %614 : vector<8x128xf32>
    %cst_24 = arith.constant 0.000000e+00 : f32
    %622 = vector.broadcast %cst_24 : f32 to vector<8x128xf32>
    %623 = arith.subf %622, %616 : vector<8x128xf32>
    %624 = math.exp %623 : vector<8x128xf32>
    %625 = arith.mulf %621, %624 : vector<8x128xf32>
    %cst_25 = arith.constant 1.000000e+00 : f32
    %626 = vector.broadcast %cst_25 : f32 to vector<8x128xf32>
    %627 = arith.subf %625, %626 : vector<8x128xf32>
    %628 = vector.broadcast %154 : f32 to vector<8x128xf32>
    %629 = arith.subf %628, %616 : vector<8x128xf32>
    %630 = arith.mulf %620, %620 : vector<8x128xf32>
    %631 = arith.mulf %627, %627 : vector<8x128xf32>
    %632 = arith.addf %630, %631 : vector<8x128xf32>
    %cst_26 = arith.constant 5.000000e-01 : f32
    %633 = vector.broadcast %cst_26 : f32 to vector<8x128xf32>
    %634 = arith.mulf %633, %632 : vector<8x128xf32>
    %635 = arith.subf %629, %634 : vector<8x128xf32>
    %636 = arith.index_cast %158 : i32 to index
    %c0_27 = arith.constant 0 : index
    %637 = vector.load %arg3[%636, %c0_27] : memref<8x128xf32, #tpu.memory_space<vmem>>, vector<8x128xf32>
    tpu.vector_store %arg3[%636, %c0_27], %635 {strides = array<i32>} : memref<8x128xf32, #tpu.memory_space<vmem>>, vector<8x128xf32>,
    %c1_i32_28 = arith.constant 1 : i32
    return
  }
  func.func @transform_0(%arg0: i32, %arg1: memref<155xf32, #tpu.memory_space<smem>>) -> (i32, i32, i32) {
    %c0_i32 = arith.constant 0 : i32
    %c0_i32_0 = arith.constant 0 : i32
    %c0_i32_1 = arith.constant 0 : i32
    return %c0_i32, %arg0, %c0_i32_0 : i32, i32, i32
  }
  func.func @transform_1(%arg0: i32, %arg1: memref<155xf32, #tpu.memory_space<smem>>) -> (i32, i32) {
    %c0_i32 = arith.constant 0 : i32
    %c0_i32_0 = arith.constant 0 : i32
    return %arg0, %c0_i32 : i32, i32
  }
}

</mosaic_0001>

<bundles_post_ra>
// kernel: tpu_custom_call.1
= control target key start
LH: loop header
LB: loop body
LE: loop exit
PB: predicated region body
PF: predicated region fallthrough
CT: control target
= control target key end

     0   :  { %s890_s12 = smov [#allocation3]   ;;  %s1569_s0 = inlined_call_operand.hbm [shape: f32[155], index: 0, kind: input, shape index: {}]   ;;  %s1570_s1 = inlined_call_operand.hbm [shape: f32[2,8,128], index: 1, kind: input, shape index: {}]   ;;  %s1571_s2 = inlined_call_operand.hbm [shape: f32[8,128], index: 2, kind: output, shape index: {}]  }
   0x1   :  { %1572 = sst [smem:[#allocation35_spill]] %s1571_s2  ;;  %s8_s11 = sshll.u32 %s1569_s0, 4  ;;  %s9_s11 = int_to_ptr.hbm [resolvable:$true] %s8_s11 }
   0x2   :  { %11 = dma.hbm_to_smem %s9_s11, 32, %s890_s12, [#allocation2] }
   0x3   :  { %884 = dma.done.wait [#allocation2], 32 }
   0x4   :  { %885 = vsyncadd [#allocation2], 4294967264 }
   0x5   :  { %14 = sfence }
   0x6   :  { %15 = vsyncpa [#allocation5], 0 }
   0x7   :  { %16 = vsyncpa [#allocation6], 0  ;;  %s21_s15 = sshll.u32 %s1570_s1, 4  ;;  %s891_s16 = smov [#allocation4]   ;;  %s22_s15 = int_to_ptr.hbm [resolvable:$true] %s21_s15 }
   0x8   :  { %s23_s17 = sshll.u32 %s891_s16, 4  ;;  %s892_s18 = smov 128   ;;  %s24_s17 = int_to_ptr.vmem [resolvable:$true] %s23_s17 }
   0x9   :  { %s893_s19 = smov 8  }
   0xa   :  { %29 = dma.hbm_to_vmem [thread:$0]  %s22_s15, 256, %s24_s17, [#allocation5], %s892_s18, %s892_s18, %s893_s19  }
   0xb   :  { %886 = dma.done.wait [#allocation5], 256  }
   0xc   :  { %887 = vsyncadd [#allocation5], 4294967040  ;;  %s916_s0 = sld [smem:[#allocation3]]  ;;  %v1020_v0 = vld [vmem:[#allocation4 + $0x8] sm:$0xff] }
   0xd   :  { %s918_s20 = sld [smem:[#allocation3 + $0x1]] }
   0xe   :  { %s920_s21 = sld [smem:[#allocation3 + $0x2]] }
   0xf   :  { %s922_s22 = sld [smem:[#allocation3 + $0x3]] }
  0x10   :  { %s924_s23 = sld [smem:[#allocation3 + $0x4]] }
  0x11   :  { %s926_s1 = sld [smem:[#allocation3 + $0x5]] }
  0x12   :  { %s928_s24 = sld [smem:[#allocation3 + $0x6]]  ;;  %v193_v1 = vstv %s916_s0 }
  0x13   :  { %s930_s25 = sld [smem:[#allocation3 + $0x7]]  ;;  %v198_v2 = vstv %s918_s20  ;;  %v194_v3 = vmul.f32 %v193_v1, %v1020_v0 }
  0x14   :  { %s932_s26 = sld [smem:[#allocation3 + $0x8]]  ;;  %v199_v4 = vmul.f32 %v198_v2, %v1020_v0  ;;  %v203_v7 = vstv %s920_s21 }
  0x15   :  { %s934_s27 = sld [smem:[#allocation3 + $0x9]]  ;;  %v204_v10 = vmul.f32 %v203_v7, %v1020_v0  ;;  %v208_v12 = vstv %s922_s22 }
  0x16   :  { %s936_s28 = sld [smem:[#allocation3 + $0xa]]  ;;  %v209_v16 = vmul.f32 %v208_v12, %v1020_v0  ;;  %v213_v18 = vstv %s924_s23 }
  0x17   :  { %s938_s29 = sld [smem:[#allocation3 + $0xb]]  ;;  %v214_v23 = vmul.f32 %v213_v18, %v1020_v0  ;;  %v218_v26 = vstv %s926_s1 }
  0x18   :  { %s940_s30 = sld [smem:[#allocation3 + $0xc]]  ;;  %v219_v31 = vmul.f32 %v218_v26, %v1020_v0  ;;  %v223_v34 = vstv %s928_s24 }
  0x19   :  { %s942_s3 = sld [smem:[#allocation3 + $0xd]]  ;;  %v224_v39 = vmul.f32 %v223_v34, %v1020_v0  ;;  %v228_v42 = vstv %s930_s25 }
  0x1a   :  { %s944_s4 = sld [smem:[#allocation3 + $0xe]]  ;;  %v229_v47 = vmul.f32 %v228_v42, %v1020_v0  ;;  %v233_v50 = vstv %s932_s26 }
  0x1b   :  { %s946_s5 = sld [smem:[#allocation3 + $0xf]]  ;;  %v234_v55 = vmul.f32 %v233_v50, %v1020_v0  ;;  %v238_v58 = vstv %s934_s27 }
  0x1c   :  { %s948_s6 = sld [smem:[#allocation3 + $0x10]]  ;;  %v195_v5 = vstv %s936_s28  ;;  %v239_v63 = vmul.f32 %v238_v58, %v1020_v0 }
  0x1d   :  { %s950_s7 = sld [smem:[#allocation3 + $0x11]]  ;;  %v200_v6 = vstv %s938_s29  ;;  %v196_v8 = vadd.f32 %v195_v5, %v194_v3 }
  0x1e   :  { %s952_s8 = sld [smem:[#allocation3 + $0x12]]  ;;  %v201_v9 = vadd.f32 %v200_v6, %v199_v4  ;;  %v205_v11 = vstv %s940_s30 }
  0x1f   :  { %s954_s9 = sld [smem:[#allocation3 + $0x13]]  ;;  %v1042_v13 = vmax.f32 %v196_v8, 0.0  ;;  %v206_v15 = vadd.f32 %v205_v11, %v204_v10  ;;  %v210_v17 = vstv %s942_s3 }
  0x20   :  { %s956_s10 = sld [smem:[#allocation3 + $0x14]]  ;;  %v1044_v14 = vmax.f32 %v201_v9, 0.0  ;;  %v211_v22 = vadd.f32 %v210_v17, %v209_v16  ;;  %v215_v25 = vstv %s944_s4 }
  0x21   :  { %s958_s11 = sld [smem:[#allocation3 + $0x15]]  ;;  %v1055_v21 = vmax.f32 %v206_v15, 0.0  ;;  %v216_v30 = vadd.f32 %v215_v25, %v214_v23  ;;  %v220_v33 = vstv %s946_s5 }
  0x22   :  { %s960_s12 = sld [smem:[#allocation3 + $0x16]]  ;;  %v1067_v29 = vmax.f32 %v211_v22, 0.0  ;;  %v221_v38 = vadd.f32 %v220_v33, %v219_v31  ;;  %v225_v41 = vstv %s948_s6 }
  0x23   :  { %s962_s13 = sld [smem:[#allocation3 + $0x17]]  ;;  %v1078_v37 = vmax.f32 %v216_v30, 0.0  ;;  %v226_v46 = vadd.f32 %v225_v41, %v224_v39  ;;  %v230_v49 = vstv %s950_s7 }
  0x24   :  { %s964_s14 = sld [smem:[#allocation3 + $0x18]]  ;;  %v1089_v45 = vmax.f32 %v221_v38, 0.0  ;;  %v231_v54 = vadd.f32 %v230_v49, %v229_v47  ;;  %v235_v57 = vstv %s952_s8 }
  0x25   :  { %1573 = sst [smem:[#allocation11_spill]] %s954_s9  ;;  %v1100_v53 = vmax.f32 %v226_v46, 0.0  ;;  %v236_v62 = vadd.f32 %v235_v57, %v234_v55 }
  0x26   :  { %s966_s15 = sld [smem:[#allocation3 + $0x19]]  ;;  %v243_v19 = vstv %s956_s10  ;;  %v1111_v61 = vmax.f32 %v231_v54, 0.0 }
  0x27   :  { %1574 = sst [smem:[#allocation12_spill]] %s958_s11  ;;  %v244_v24 = vmul.f32 %v243_v19, %v1042_v13  ;;  %v1122_v6 = vmax.f32 %v236_v62, 0.0 }
  0x28   :  { %1575 = sst [smem:[#allocation13_spill]] %s960_s12 }
  0x29   :  { %1576 = sst [smem:[#allocation14_spill]] %s962_s13 }
  0x2a   :  { %1577 = sst [smem:[#allocation15_spill]] %s964_s14 }
  0x2b   :  { %s968_s16 = sld [smem:[#allocation3 + $0x1a]] }
  0x2c   :  { %1578 = sst [smem:[#allocation16_spill]] %s966_s15 }
  0x2d   :  { %s970_s17 = sld [smem:[#allocation3 + $0x1b]] }
  0x2e   :  { %s972_s18 = sld [smem:[#allocation3 + $0x1c]] }
  0x2f   :  { %s974_s19 = sld [smem:[#allocation3 + $0x1d]] }
  0x30   :  { %s976_s2 = sld [smem:[#allocation3 + $0x1e]] }
  0x31   :  { %1579 = sst [smem:[#allocation17_spill]] %s968_s16 }
  0x32   :  { %s978_s9 = sld [smem:[#allocation3 + $0x1f]] }
  0x33   :  { %1580 = sst [smem:[#allocation18_spill]] %s970_s17 }
  0x34   :  { %1581 = sst [smem:[#allocation19_spill]] %s972_s18 }
  0x35   :  { %1582 = sst [smem:[#allocation20_spill]] %s974_s19 }
  0x36   :  { %s980_s11 = sld [smem:[#allocation3 + $0x20]]  ;;  %v245_v20 = vstv %s976_s2 }
  0x37   :  { %s982_s12 = sld [smem:[#allocation3 + $0x21]]  ;;  %v246_v27 = vmul.f32 %v245_v20, %v1044_v14 }
  0x38   :  { %1583 = sst [smem:[#allocation21_spill]] %s978_s9 }
  0x39   :  { %s984_s13 = sld [smem:[#allocation3 + $0x22]]  ;;  %v247_v35 = vadd.f32 %v246_v27, %v244_v24 }
  0x3a   :  { %s986_s14 = sld [smem:[#allocation3 + $0x23]] }
  0x3b   :  { %s988_s15 = sld [smem:[#allocation3 + $0x24]] }
  0x3c   :  { %1584 = sst [smem:[#allocation22_spill]] %s980_s11 }
  0x3d   :  { %1585 = sst [smem:[#allocation23_spill]] %s982_s12 }
  0x3e   :  { %s990_s16 = sld [smem:[#allocation3 + $0x25]] }
  0x3f   :  { %1586 = sst [smem:[#allocation24_spill]] %s984_s13 }
  0x40   :  { %1587 = sst [smem:[#allocation25_spill]] %s986_s14 }
  0x41   :  { %1588 = sst [smem:[#allocation26_spill]] %s988_s15 }
  0x42   :  { %s992_s18 = sld [smem:[#allocation3 + $0x26]] }
  0x43   :  { %s994_s19 = sld [smem:[#allocation3 + $0x27]] }
  0x44   :  { %1589 = sst [smem:[#allocation27_spill]] %s990_s16 }
  0x45   :  { %s996_s17 = sld [smem:[#allocation3 + $0x28]] }
  0x46   :  { %s998_s9 = sld [smem:[#allocation3 + $0x29]] }
  0x47   :  { %s1000_s11 = sld [smem:[#allocation3 + $0x2a]] }
  0x48   :  { %1590 = sst [smem:[#allocation28_spill]] %s992_s18 }
  0x49   :  { %1591 = sst [smem:[#allocation29_spill]] %s994_s19 }
  0x4a   :  { %s1002_s12 = sld [smem:[#allocation3 + $0x2b]] }
  0x4b   :  { %s1004_s14 = sld [smem:[#allocation3 + $0x2c]]  ;;  %v248_v28 = vstv %s996_s17 }
  0x4c   :  { %1592 = sst [smem:[#allocation30_spill]] %s998_s9  ;;  %v249_v32 = vmul.f32 %v248_v28, %v1055_v21 }
  0x4d   :  { %1593 = sst [smem:[#allocation31_spill]] %s1000_s11 }
  0x4e   :  { %s1006_s15 = sld [smem:[#allocation3 + $0x2d]]  ;;  %v250_v43 = vadd.f32 %v249_v32, %v247_v35 }
  0x4f   :  { %s1008_s16 = sld [smem:[#allocation3 + $0x2e]] }
  0x50   :  { %s1010_s18 = sld [smem:[#allocation3 + $0x2f]] }
  0x51   :  { %s1012_s19 = sld [smem:[#allocation3 + $0x30]] }
  0x52   :  { %s1014_s13 = sld [smem:[#allocation3 + $0x31]] }
  0x53   :  { %s1016_s9 = sld [smem:[#allocation3 + $0x32]] }
  0x54   :  { %1594 = sst [smem:[#allocation32_spill]] %s1006_s15 }
  0x55   :  { %s1018_s11 = sld [smem:[#allocation3 + $0x33]] }
  0x56   :  { %1595 = sst [smem:[#allocation33_spill]] %s1010_s18 }
  0x57   :  { %s1024_s15 = sld [smem:[#allocation3 + $0x34]] }
  0x58   :  { %1596 = sst [smem:[#allocation34_spill]] %s1014_s13 }
  0x59   :  { %s1028_s18 = sld [smem:[#allocation3 + $0x35]]  ;;  %v251_v36 = vstv %s1016_s9 }
  0x5a   :  { %s1033_s13 = sld [smem:[#allocation3 + $0x36]]  ;;  %v252_v40 = vmul.f32 %v251_v36, %v1067_v29 }
  0x5b   :  { %s1036_s0 = sld [smem:[#allocation3 + $0x3c]]  ;;  %v283_v12 = vstv %s1018_s11 }
  0x5c   :  { %s1040_s20 = sld [smem:[#allocation3 + $0x37]]  ;;  %v253_v51 = vadd.f32 %v252_v40, %v250_v43  ;;  %v284_v22 = vmul.f32 %v283_v12, %v1067_v29 }
  0x5d   :  { %s1047_s21 = sld [smem:[#allocation3 + $0x46]]  ;;  %v315_v46 = vstv %s1024_s15 }
  0x5e   :  { %s1053_s28 = sld [smem:[#allocation3 + $0x38]]  ;;  %v316_v47 = vmul.f32 %v315_v46, %v1067_v29 }
  0x5f   :  { %s1059_s22 = sld [smem:[#allocation3 + $0x50]] }
  0x60   :  { %s1065_s2 = sld [smem:[#allocation3 + $0x39]] }
  0x61   :  { %s1071_s23 = sld [smem:[#allocation3 + $0x5a]]  ;;  %v254_v44 = vstv %s1036_s0 }
  0x62   :  { %s1076_s1 = sld [smem:[#allocation3 + $0x3a]]  ;;  %v255_v48 = vmul.f32 %v254_v44, %v1078_v37 }
  0x63   :  { %s1082_s29 = sld [smem:[#allocation3 + $0x3d]]  ;;  %v257_v52 = vstv %s1047_s21 }
  0x64   :  { %s1087_s24 = sld [smem:[#allocation3 + $0x47]]  ;;  %v258_v56 = vmul.f32 %v257_v52, %v1089_v45  ;;  %v256_v59 = vadd.f32 %v255_v48, %v253_v51 }
  0x65   :  { %s1093_s30 = sld [smem:[#allocation3 + $0x51]]  ;;  %v260_v60 = vstv %s1059_s22 }
  0x66   :  { %s1098_s25 = sld [smem:[#allocation3 + $0x64]]  ;;  %v261_v1 = vmul.f32 %v260_v60, %v1100_v53  ;;  %v259_v3 = vadd.f32 %v258_v56, %v256_v59 }
  0x67   :  { %s1597_s3 = sld [smem:[#allocation11_spill]]  ;;  %v263_v4 = vstv %s1071_s23 }
  0x68   :  { %s1598_s4 = sld [smem:[#allocation12_spill]]  ;;  %v264_v8 = vmul.f32 %v263_v4, %v1111_v61  ;;  %v262_v9 = vadd.f32 %v261_v1, %v259_v3 }
  0x69   :  { %s1104_s5 = sld [smem:[#allocation3 + $0x5b]]  ;;  %v286_v23 = vstv %s1082_s29 }
  0x6a   :  { %s1109_s26 = sld [smem:[#allocation3 + $0x65]]  ;;  %v265_v19 = vadd.f32 %v264_v8, %v262_v9  ;;  %v287_v25 = vmul.f32 %v286_v23, %v1078_v37  ;;  %v289_v26 = vstv %s1087_s24 }
  0x6b   :  { %s1599_s6 = sld [smem:[#allocation21_spill]]  ;;  %v292_v27 = vstv %s1093_s30  ;;  %v290_v30 = vmul.f32 %v289_v26, %v1089_v45 }
  0x6c   :  { %s1600_s7 = sld [smem:[#allocation30_spill]]  ;;  %v266_v16 = vstv %s1098_s25  ;;  %v293_v31 = vmul.f32 %v292_v27, %v1100_v53 }
  0x6d   :  { %s1115_s9 = sld [smem:[#allocation3 + $0x3e]]  ;;  %v240_v2 = vstv %s1597_s3  ;;  %v267_v20 = vmul.f32 %v266_v16, %v1122_v6  ;;  %v344_v16 = vstv %s1002_s12 }
  0x6e   :  { %v275_v5 = vstv %s1598_s4  ;;  %s1120_s27 = sld [smem:[#allocation3 + $0x48]]  ;;  %v241_v7 = vadd.f32 %v240_v2, %v239_v63 }
  0x6f   :  { %v276_v0 = vmul.f32 %v275_v5, %v1042_v13  ;;  %s1126_s8 = sld [smem:[#allocation3 + $0x52]]  ;;  %v268_v28 = vadd.f32 %v267_v20, %v265_v19  ;;  %v295_v32 = vstv %s1104_s5  ;;  %v345_v20 = vmul.f32 %v344_v16, %v1055_v21 }
  0x70   :  { %s1131_s10 = sld [smem:[#allocation3 + $0x5c]]  ;;  %v1133_v15 = vmax.f32 %v241_v7, 0.0  ;;  %v296_v34 = vmul.f32 %v295_v32, %v1111_v61  ;;  %v298_v35 = vstv %s1109_s26 }
  0x71   :  { %v277_v10 = vstv %s1599_s6  ;;  %s1138_s17 = sld [smem:[#allocation3 + $0x66]]  ;;  %v299_v38 = vmul.f32 %v298_v35, %v1122_v6 }
  0x72   :  { %v280_v11 = vstv %s1600_s7  ;;  %v278_v17 = vmul.f32 %v277_v10, %v1044_v14  ;;  %s1601_s0 = sld [smem:[#allocation13_spill]] }
  0x73   :  { %v281_v18 = vmul.f32 %v280_v11, %v1055_v21  ;;  %s1143_s11 = sld [smem:[#allocation3 + $0x3f]]  ;;  %v318_v48 = vstv %s1115_s9 }
  0x74   :  { %v279_v24 = vadd.f32 %v278_v17, %v276_v0  ;;  %s1602_s21 = sld [smem:[#allocation22_spill]]  ;;  %v321_v49 = vstv %s1120_s27  ;;  %v319_v54 = vmul.f32 %v318_v48, %v1078_v37 }
  0x75   :  { %s1603_s22 = sld [smem:[#allocation31_spill]]  ;;  %v324_v50 = vstv %s1126_s8  ;;  %v322_v55 = vmul.f32 %v321_v49, %v1089_v45 }
  0x76   :  { %s1148_s23 = sld [smem:[#allocation3 + $0x49]]  ;;  %v282_v33 = vadd.f32 %v281_v18, %v279_v24  ;;  %v325_v56 = vmul.f32 %v324_v50, %v1100_v53  ;;  %v327_v57 = vstv %s1131_s10 }
  0x77   :  { %s1153_s25 = sld [smem:[#allocation3 + $0x6e]]  ;;  %v330_v58 = vstv %s1138_s17  ;;  %v328_v1 = vmul.f32 %v327_v57, %v1111_v61 }
  0x78   :  { %v307_v36 = vstv %s1601_s0  ;;  %s1158_s29 = sld [smem:[#allocation3 + $0x6f]]  ;;  %v285_v42 = vadd.f32 %v284_v22, %v282_v33  ;;  %v331_v4 = vmul.f32 %v330_v58, %v1122_v6  ;;  %v347_v22 = vstv %s1028_s18 }
  0x79   :  { %v308_v39 = vmul.f32 %v307_v36, %v1042_v13  ;;  %s1164_s24 = sld [smem:[#allocation3 + $0x70]]  ;;  %v350_v23 = vstv %s1143_s11 }
  0x7a   :  { %v309_v40 = vstv %s1602_s21  ;;  %s1604_s30 = sld [smem:[#allocation14_spill]]  ;;  %v288_v51 = vadd.f32 %v287_v25, %v285_v42 }
  0x7b   :  { %v312_v41 = vstv %s1603_s22  ;;  %v310_v43 = vmul.f32 %v309_v40, %v1044_v14  ;;  %s1169_s3 = sld [smem:[#allocation3 + $0x53]] }
  0x7c   :  { %v313_v44 = vmul.f32 %v312_v41, %v1055_v21  ;;  %s1175_s4 = sld [smem:[#allocation3 + $0x40]]  ;;  %v291_v62 = vadd.f32 %v290_v30, %v288_v51  ;;  %v353_v24 = vstv %s1148_s23  ;;  %v348_v30 = vmul.f32 %v347_v22, %v1067_v29 }
  0x7d   :  { %v311_v52 = vadd.f32 %v310_v43, %v308_v39  ;;  %s1179_s5 = sld [smem:[#allocation3 + $0x5d]]  ;;  %v269_v60 = vstv %s1153_s25  ;;  %v354_v32 = vmul.f32 %v353_v24, %v1089_v45 }
  0x7e   :  { %s1185_s15 = sld [smem:[#allocation3 + $0x67]]  ;;  %v270_v2 = vmul.f32 %v269_v60, %v1133_v15  ;;  %v301_v3 = vstv %s1158_s29  ;;  %v294_v7 = vadd.f32 %v293_v31, %v291_v62  ;;  %v351_v31 = vmul.f32 %v350_v23, %v1078_v37 }
  0x7f   :  { %s1605_s26 = sld [smem:[#allocation23_spill]]  ;;  %v314_v63 = vadd.f32 %v313_v44, %v311_v52  ;;  %v302_v8 = vmul.f32 %v301_v3, %v1133_v15  ;;  %v333_v9 = vstv %s1164_s24  ;;  %v376_v62 = vstv %s1004_s14 }
  0x80   :  { %v339_v59 = vstv %s1604_s30  ;;  %s1189_s6 = sld [smem:[#allocation3 + $0x71]]  ;;  %v271_v10 = vadd.f32 %v270_v2, %v268_v28  ;;  %v334_v11 = vmul.f32 %v333_v9, %v1133_v15  ;;  %v297_v17 = vadd.f32 %v296_v34, %v294_v7 }
  0x81   :  { %v340_v5 = vmul.f32 %v339_v59, %v1042_v13  ;;  %s1195_s7 = sld [smem:[#allocation3 + $0x4a]]  ;;  %v317_v0 = vadd.f32 %v316_v47, %v314_v63  ;;  %v356_v25 = vstv %s1169_s3  ;;  %v377_v3 = vmul.f32 %v376_v62, %v1055_v21 }
  0x82   :  { %s1199_s9 = sld [smem:[#allocation3 + $0x54]]  ;;  %v300_v26 = vadd.f32 %v299_v38, %v297_v17  ;;  %v357_v33 = vmul.f32 %v356_v25, %v1100_v53  ;;  %v382_v7 = vstv %s1175_s4 }
  0x83   :  { %s1204_s27 = sld [smem:[#allocation3 + $0x78]]  ;;  %v320_v18 = vadd.f32 %v319_v54, %v317_v0  ;;  %v359_v34 = vstv %s1179_s5 }
  0x84   :  { %s1208_s8 = sld [smem:[#allocation3 + $0x79]]  ;;  %v303_v35 = vadd.f32 %v302_v8, %v300_v26  ;;  %v360_v39 = vmul.f32 %v359_v34, %v1111_v61  ;;  %v362_v40 = vstv %s1185_s15 }
  0x85   :  { %v341_v12 = vstv %s1605_s26  ;;  %s1214_s10 = sld [smem:[#allocation3 + $0x7a]]  ;;  %v323_v27 = vadd.f32 %v322_v55, %v320_v18  ;;  %v363_v48 = vmul.f32 %v362_v40, %v1122_v6 }
  0x86   :  { %v342_v19 = vmul.f32 %v341_v12, %v1044_v14  ;;  %s1606_s12 = sld [smem:[#allocation15_spill]]  ;;  %v365_v41 = vstv %s1189_s6 }
  0x87   :  { %s1607_s17 = sld [smem:[#allocation24_spill]]  ;;  %v326_v36 = vadd.f32 %v325_v56, %v323_v27  ;;  %v366_v51 = vmul.f32 %v365_v41, %v1133_v15  ;;  %v385_v8 = vstv %s1195_s7  ;;  %v411_v41 = vstv %s1040_s20 }
  0x88   :  { %v343_v28 = vadd.f32 %v342_v19, %v340_v5  ;;  %s1217_s0 = sld [smem:[#allocation3 + $0x7b]]  ;;  %v379_v5 = vstv %s1033_s13  ;;  %v386_v16 = vmul.f32 %v385_v8, %v1089_v45  ;;  %v388_v17 = vstv %s1199_s9 }
  0x89   :  { %s1223_s18 = sld [smem:[#allocation3 + $0x5e]]  ;;  %v272_v44 = vstv %s1204_s27  ;;  %v329_v46 = vadd.f32 %v328_v1, %v326_v36  ;;  %v389_v22 = vmul.f32 %v388_v17, %v1100_v53  ;;  %v440_v17 = vstv %s1008_s16 }
  0x8a   :  { %v346_v38 = vadd.f32 %v345_v20, %v343_v28  ;;  %s1226_s11 = sld [smem:[#allocation3 + $0x68]]  ;;  %v1238_v49 = vadd.f32 %v272_v44, %v271_v10  ;;  %v304_v50 = vstv %s1208_s8  ;;  %v380_v10 = vmul.f32 %v379_v5, %v1067_v29 }
  0x8b   :  { %s1232_s21 = sld [smem:[#allocation3 + $0x72]]  ;;  %v1245_v54 = vadd.f32 %v304_v50, %v303_v35  ;;  %v332_v55 = vadd.f32 %v331_v4, %v329_v46  ;;  %v336_v56 = vstv %s1214_s10 }
  0x8c   :  { %v371_v42 = vstv %s1606_s12  ;;  %v349_v47 = vadd.f32 %v348_v30, %v346_v38  ;;  %s1236_s22 = sld [smem:[#allocation3 + $0x7c]]  ;;  %v274_v58 = vmax.f32 %v1238_v49, 0.0 }
  0x8d   :  { %v373_v43 = vstv %s1607_s17  ;;  %v372_v52 = vmul.f32 %v371_v42, %v1042_v13  ;;  %s1243_s23 = sld [smem:[#allocation3 + $0x3b]]  ;;  %v306_v63 = vmax.f32 %v1245_v54, 0.0  ;;  %v335_v1 = vadd.f32 %v334_v11, %v332_v55 }
  0x8e   :  { %v352_v57 = vadd.f32 %v351_v31, %v349_v47  ;;  %s1248_s25 = sld [smem:[#allocation3 + $0x41]]  ;;  %v368_v59 = vstv %s1217_s0  ;;  %v374_v60 = vmul.f32 %v373_v43, %v1044_v14  ;;  %v383_v11 = vmul.f32 %v382_v7, %v1078_v37 }
  0x8f   :  { %s1254_s29 = sld [smem:[#allocation3 + $0x4b]]  ;;  %v1265_v0 = vadd.f32 %v336_v56, %v335_v1  ;;  %v391_v18 = vstv %s1223_s18  ;;  %v412_v43 = vmul.f32 %v411_v41, %v1067_v29 }
  0x90   :  { %v355_v2 = vadd.f32 %v354_v32, %v352_v57  ;;  %s1258_s24 = sld [smem:[#allocation3 + $0x55]]  ;;  %v375_v4 = vadd.f32 %v374_v60, %v372_v52  ;;  %v392_v23 = vmul.f32 %v391_v18, %v1111_v61  ;;  %v394_v25 = vstv %s1226_s11 }
  0x91   :  { %s1263_s30 = sld [smem:[#allocation3 + $0x5f]]  ;;  %v338_v19 = vmax.f32 %v1265_v0, 0.0  ;;  %v397_v26 = vstv %s1232_s21  ;;  %v395_v30 = vmul.f32 %v394_v25, %v1122_v6 }
  0x92   :  { %v358_v9 = vadd.f32 %v357_v33, %v355_v2  ;;  %s1269_s14 = sld [smem:[#allocation3 + $0x69]]  ;;  %v378_v12 = vadd.f32 %v377_v3, %v375_v4  ;;  %v400_v27 = vstv %s1236_s22  ;;  %v398_v31 = vmul.f32 %v397_v26, %v1133_v15 }
  0x93   :  { %s1608_s13 = sld [smem:[#allocation16_spill]] }
  0x94   :  { %s1274_s3 = sld [smem:[#allocation3 + $0x73]]  ;;  %v361_v20 = vadd.f32 %v360_v39, %v358_v9  ;;  %v381_v24 = vadd.f32 %v380_v10, %v378_v12  ;;  %v414_v44 = vstv %s1248_s25 }
  0x95   :  { %s1609_s4 = sld [smem:[#allocation25_spill]]  ;;  %v417_v46 = vstv %s1254_s29  ;;  %v415_v50 = vmul.f32 %v414_v44, %v1078_v37 }
  0x96   :  { %s1610_s5 = sld [smem:[#allocation32_spill]]  ;;  %v364_v28 = vadd.f32 %v363_v48, %v361_v20  ;;  %v384_v33 = vadd.f32 %v383_v11, %v381_v24  ;;  %v420_v55 = vstv %s1258_s24  ;;  %v441_v20 = vmul.f32 %v440_v17, %v1055_v21 }
  0x97   :  { %s1279_s15 = sld [smem:[#allocation3 + $0x7d]]  ;;  %v423_v56 = vstv %s1263_s30  ;;  %v421_v62 = vmul.f32 %v420_v55, %v1100_v53 }
  0x98   :  { %s1284_s26 = sld [smem:[#allocation3 + $0x42]]  ;;  %v367_v38 = vadd.f32 %v366_v51, %v364_v28  ;;  %v387_v42 = vadd.f32 %v386_v16, %v384_v33  ;;  %v418_v51 = vmul.f32 %v417_v46, %v1089_v45  ;;  %v426_v57 = vstv %s1269_s14 }
  0x99   :  { %v403_v32 = vstv %s1608_s13  ;;  %s1289_s6 = sld [smem:[#allocation3 + $0x43]]  ;;  %v424_v1 = vmul.f32 %v423_v56, %v1111_v61  ;;  %v427_v3 = vmul.f32 %v426_v57, %v1122_v6 }
  0x9a   :  { %v404_v34 = vmul.f32 %v403_v32, %v1042_v13  ;;  %s1294_s7 = sld [smem:[#allocation3 + $0x4c]]  ;;  %v1306_v47 = vadd.f32 %v368_v59, %v367_v38  ;;  %v390_v52 = vadd.f32 %v389_v22, %v387_v42  ;;  %v429_v4 = vstv %s1274_s3 }
  0x9b   :  { %v405_v35 = vstv %s1609_s4  ;;  %s1299_s9 = sld [smem:[#allocation3 + $0x56]]  ;;  %v430_v8 = vmul.f32 %v429_v4, %v1133_v15  ;;  %v443_v22 = vstv %s1053_s28 }
  0x9c   :  { %v408_v36 = vstv %s1610_s5  ;;  %v406_v39 = vmul.f32 %v405_v35, %v1044_v14  ;;  %s1304_s27 = sld [smem:[#allocation3 + $0x60]]  ;;  %v370_v59 = vmax.f32 %v1306_v47, 0.0  ;;  %v393_v2 = vadd.f32 %v392_v23, %v390_v52 }
  0x9d   :  { %v409_v40 = vmul.f32 %v408_v36, %v1055_v21  ;;  %s1310_s8 = sld [smem:[#allocation3 + $0x6a]]  ;;  %v432_v5 = vstv %s1279_s15  ;;  %v444_v26 = vmul.f32 %v443_v22, %v1067_v29 }
  0x9e   :  { %v407_v48 = vadd.f32 %v406_v39, %v404_v34  ;;  %s1611_s20 = sld [smem:[#allocation17_spill]]  ;;  %v396_v11 = vadd.f32 %v395_v30, %v393_v2  ;;  %v446_v23 = vstv %s1284_s26 }
  0x9f   :  { %s1612_s10 = sld [smem:[#allocation26_spill]]  ;;  %v447_v28 = vmul.f32 %v446_v23, %v1078_v37  ;;  %v478_v4 = vstv %s1289_s6 }
  0xa0   :  { %s1315_s12 = sld [smem:[#allocation3 + $0x74]]  ;;  %v410_v60 = vadd.f32 %v409_v40, %v407_v48  ;;  %v399_v24 = vadd.f32 %v398_v31, %v396_v11  ;;  %v449_v32 = vstv %s1294_s7  ;;  %v479_v11 = vmul.f32 %v478_v4, %v1078_v37 }
  0xa1   :  { %s1320_s17 = sld [smem:[#allocation3 + $0x44]]  ;;  %v452_v33 = vstv %s1299_s9  ;;  %v450_v36 = vmul.f32 %v449_v32, %v1089_v45 }
  0xa2   :  { %s1325_s0 = sld [smem:[#allocation3 + $0x7e]]  ;;  %v413_v7 = vadd.f32 %v412_v43, %v410_v60  ;;  %v455_v34 = vstv %s1304_s27  ;;  %v1353_v35 = vadd.f32 %v400_v27, %v399_v24  ;;  %v453_v38 = vmul.f32 %v452_v33, %v1100_v53 }
  0xa3   :  { %s1330_s18 = sld [smem:[#allocation3 + $0x45]]  ;;  %v456_v40 = vmul.f32 %v455_v34, %v1111_v61  ;;  %v458_v41 = vstv %s1310_s8 }
  0xa4   :  { %v435_v9 = vstv %s1611_s20  ;;  %s1335_s11 = sld [smem:[#allocation3 + $0x4d]]  ;;  %v416_v18 = vadd.f32 %v415_v50, %v413_v7  ;;  %v402_v27 = vmax.f32 %v1353_v35, 0.0  ;;  %v459_v44 = vmul.f32 %v458_v41, %v1122_v6 }
  0xa5   :  { %v437_v10 = vstv %s1612_s10  ;;  %v436_v12 = vmul.f32 %v435_v9, %v1042_v13  ;;  %s1340_s21 = sld [smem:[#allocation3 + $0x57]] }
  0xa6   :  { %v438_v16 = vmul.f32 %v437_v10, %v1044_v14  ;;  %s1344_s25 = sld [smem:[#allocation3 + $0x61]]  ;;  %v419_v30 = vadd.f32 %v418_v51, %v416_v18  ;;  %v461_v42 = vstv %s1315_s12 }
  0xa7   :  { %s1349_s16 = sld [smem:[#allocation3 + $0x6b]]  ;;  %v462_v46 = vmul.f32 %v461_v42, %v1133_v15  ;;  %v504_v42 = vstv %s1012_s19 }
  0xa8   :  { %v439_v25 = vadd.f32 %v438_v16, %v436_v12  ;;  %s1613_s28 = sld [smem:[#allocation18_spill]]  ;;  %v422_v39 = vadd.f32 %v421_v62, %v419_v30  ;;  %v464_v50 = vstv %s1325_s0 }
  0xa9   :  { %s1614_s29 = sld [smem:[#allocation27_spill]] }
  0xaa   :  { %v442_v31 = vadd.f32 %v441_v20, %v439_v25  ;;  %s1357_s24 = sld [smem:[#allocation3 + $0x75]]  ;;  %v425_v48 = vadd.f32 %v424_v1, %v422_v39  ;;  %v475_v1 = vstv %s1065_s2  ;;  %v481_v16 = vstv %s1335_s11 }
  0xab   :  { %s1615_s30 = sld [smem:[#allocation33_spill]]  ;;  %v476_v10 = vmul.f32 %v475_v1, %v1067_v29  ;;  %v482_v22 = vmul.f32 %v481_v16, %v1089_v45 }
  0xac   :  { %s1362_s14 = sld [smem:[#allocation3 + $0x4e]]  ;;  %v445_v43 = vadd.f32 %v444_v26, %v442_v31  ;;  %v428_v62 = vadd.f32 %v427_v3, %v425_v48  ;;  %v484_v3 = vstv %s1340_s21  ;;  %v487_v17 = vstv %s1344_s25 }
  0xad   :  { %s1367_s22 = sld [smem:[#allocation3 + $0x7f]]  ;;  %v485_v23 = vmul.f32 %v484_v3, %v1100_v53  ;;  %v490_v25 = vstv %s1349_s16  ;;  %v510_v48 = vstv %s1320_s17 }
  0xae   :  { %v467_v51 = vstv %s1613_s28  ;;  %s1372_s13 = sld [smem:[#allocation3 + $0x4f]]  ;;  %v448_v55 = vadd.f32 %v447_v28, %v445_v43  ;;  %v431_v12 = vadd.f32 %v430_v8, %v428_v62  ;;  %v488_v8 = vmul.f32 %v487_v17, %v1111_v61 }
  0xaf   :  { %v469_v52 = vstv %s1614_s29  ;;  %v468_v56 = vmul.f32 %v467_v51, %v1042_v13  ;;  %s1377_s3 = sld [smem:[#allocation3 + $0x58]]  ;;  %v491_v32 = vmul.f32 %v490_v25, %v1122_v6  ;;  %v507_v43 = vstv %s1076_s1 }
  0xb0   :  { %v470_v57 = vmul.f32 %v469_v52, %v1044_v14  ;;  %s1382_s4 = sld [smem:[#allocation3 + $0x62]]  ;;  %v451_v7 = vadd.f32 %v450_v36, %v448_v55  ;;  %v1399_v24 = vadd.f32 %v432_v5, %v431_v12  ;;  %v493_v26 = vstv %s1357_s24 }
  0xb1   :  { %v472_v60 = vstv %s1615_s30  ;;  %s1386_s5 = sld [smem:[#allocation3 + $0x6c]]  ;;  %v494_v33 = vmul.f32 %v493_v26, %v1133_v15 }
  0xb2   :  { %v473_v2 = vmul.f32 %v472_v60, %v1055_v21  ;;  %v471_v9 = vadd.f32 %v470_v57, %v468_v56  ;;  %s1391_s26 = sld [smem:[#allocation3 + $0x76]]  ;;  %v454_v18 = vadd.f32 %v453_v38, %v451_v7  ;;  %v434_v5 = vmax.f32 %v1399_v24, 0.0 }
  0xb3   :  { %s1616_s2 = sld [smem:[#allocation19_spill]]  ;;  %v496_v34 = vstv %s1367_s22  ;;  %v513_v51 = vstv %s1362_s14  ;;  %v505_v56 = vmul.f32 %v504_v42, %v1055_v21  ;;  %v508_v57 = vmul.f32 %v507_v43, %v1067_v29 }
  0xb4   :  { %v474_v20 = vadd.f32 %v473_v2, %v471_v9  ;;  %s1617_s6 = sld [smem:[#allocation28_spill]]  ;;  %v457_v28 = vadd.f32 %v456_v40, %v454_v18  ;;  %v511_v60 = vmul.f32 %v510_v48, %v1078_v37  ;;  %v514_v62 = vmul.f32 %v513_v51, %v1089_v45 }
  0xb5   :  { %s1395_s7 = sld [smem:[#allocation3 + $0x80]]  ;;  %v516_v2 = vstv %s1377_s3 }
  0xb6   :  { %s1404_s9 = sld [smem:[#allocation3 + $0x59]]  ;;  %v477_v30 = vadd.f32 %v476_v10, %v474_v20  ;;  %v460_v38 = vadd.f32 %v459_v44, %v457_v28  ;;  %v517_v7 = vmul.f32 %v516_v2, %v1100_v53  ;;  %v519_v9 = vstv %s1382_s4 }
  0xb7   :  { %s1408_s27 = sld [smem:[#allocation3 + $0x63]]  ;;  %v522_v10 = vstv %s1386_s5  ;;  %v520_v17 = vmul.f32 %v519_v9, %v1111_v61 }
  0xb8   :  { %s1414_s15 = sld [smem:[#allocation3 + $0x6d]]  ;;  %v480_v39 = vadd.f32 %v479_v11, %v477_v30  ;;  %v463_v52 = vadd.f32 %v462_v46, %v460_v38  ;;  %v525_v11 = vstv %s1391_s26  ;;  %v523_v18 = vmul.f32 %v522_v10, %v1122_v6 }
  0xb9   :  { %v499_v31 = vstv %s1616_s2  ;;  %s1418_s8 = sld [smem:[#allocation3 + $0x77]]  ;;  %v526_v20 = vmul.f32 %v525_v11, %v1133_v15  ;;  %v545_v38 = vstv %s1372_s13 }
  0xba   :  { %v501_v36 = vstv %s1617_s6  ;;  %v500_v40 = vmul.f32 %v499_v31, %v1042_v13  ;;  %s1424_s20 = sld [smem:[#allocation3 + $0x81]]  ;;  %v483_v55 = vadd.f32 %v482_v22, %v480_v39  ;;  %v1437_v46 = vadd.f32 %v464_v50, %v463_v52 }
  0xbb   :  { %v502_v41 = vmul.f32 %v501_v36, %v1044_v14  ;;  %s1427_s10 = sld [smem:[#allocation3 + $0x82]]  ;;  %v528_v12 = vstv %s1395_s7  ;;  %v539_v31 = vstv %s1243_s23  ;;  %v542_v36 = vstv %s1330_s18 }
  0xbc   :  { %s1433_s19 = sld [smem:[#allocation3 + $0x83]]  ;;  %v486_v1 = vadd.f32 %v485_v23, %v483_v55  ;;  %v466_v16 = vmax.f32 %v1437_v46, 0.0  ;;  %v546_v42 = vmul.f32 %v545_v38, %v1089_v45  ;;  %v548_v43 = vstv %s1404_s9 }
  0xbd   :  { %v503_v44 = vadd.f32 %v502_v41, %v500_v40  ;;  %s1618_s1 = sld [smem:[#allocation20_spill]]  ;;  %v543_v41 = vmul.f32 %v542_v36, %v1078_v37  ;;  %v551_v52 = vstv %s1408_s27 }
  0xbe   :  { %s1619_s12 = sld [smem:[#allocation29_spill]]  ;;  %v489_v50 = vadd.f32 %v488_v8, %v486_v1 }
  0xbf   :  { %v506_v4 = vadd.f32 %v505_v56, %v503_v44  ;;  %s1440_s17 = sld [smem:[#allocation3 + $0x84]]  ;;  %v557_v55 = vstv %s1418_s8  ;;  %v552_v56 = vmul.f32 %v551_v52, %v1111_v61 }
  0xc0   :  { %s1446_s11 = sld [smem:[#allocation3 + $0x85]]  ;;  %v492_v25 = vadd.f32 %v491_v32, %v489_v50  ;;  %v560_v37 = vstv %s1424_s20 }
  0xc1   :  { %s1620_s21 = sld [smem:[#allocation34_spill]]  ;;  %v509_v3 = vadd.f32 %v508_v57, %v506_v4  ;;  %v558_v57 = vmul.f32 %v557_v55, %v1133_v15 }
  0xc2   :  { %s1450_s0 = sld [smem:[#allocation3 + $0x8c]]  ;;  %v495_v39 = vadd.f32 %v494_v33, %v492_v25 }
  0xc3   :  { %v531_v22 = vstv %s1618_s1  ;;  %s1456_s25 = sld [smem:[#allocation3 + $0x8d]]  ;;  %v512_v26 = vadd.f32 %v511_v60, %v509_v3  ;;  %v563_v60 = vstv %s1427_s10 }
  0xc4   :  { %v533_v23 = vstv %s1619_s12  ;;  %v532_v28 = vmul.f32 %v531_v22, %v1042_v13  ;;  %s1460_s16 = sld [smem:[#allocation3 + $0x8e]]  ;;  %v1479_v33 = vadd.f32 %v496_v34, %v495_v39  ;;  %v564_v4 = vmul.f32 %v563_v60, %v274_v58 }
  0xc5   :  { %v534_v8 = vmul.f32 %v533_v23, %v1044_v14  ;;  %s1466_s28 = sld [smem:[#allocation3 + $0x86]]  ;;  %v515_v40 = vadd.f32 %v514_v62, %v512_v26  ;;  %v540_v14 = vmul.f32 %v539_v31, %v1067_v29  ;;  %v554_v29 = vstv %s1414_s15  ;;  %s894_s15 = smov [#allocation7]  }
  0xc6   :  { %s1469_s29 = sld [smem:[#allocation3 + $0x8f]]  ;;  %v498_v45 = vmax.f32 %v1479_v33, 0.0  ;;  %v573_v15 = vstv %s1440_s17  ;;  %s648_s8 = sshll.u32 %s894_s15, 4  ;;  %s649_s8 = int_to_ptr.vmem [resolvable:$true] %s648_s8 }
  0xc7   :  { %v536_v30 = vstv %s1620_s21  ;;  %v535_v32 = vadd.f32 %v534_v8, %v532_v28  ;;  %s1475_s23 = sld [smem:[#allocation3 + $0x87]]  ;;  %v518_v48 = vadd.f32 %v517_v7, %v515_v40 }
  0xc8   :  { %v537_v13 = vmul.f32 %v536_v30, %v1055_v21  ;;  %v549_v21 = vmul.f32 %v548_v43, %v1100_v53  ;;  %s1482_s18 = sld [smem:[#allocation3 + $0x90]]  ;;  %v555_v53 = vmul.f32 %v554_v29, %v1122_v6  ;;  %v565_v62 = vstv %s1450_s0 }
  0xc9   :  { %s1488_s24 = sld [smem:[#allocation3 + $0x88]]  ;;  %v521_v34 = vadd.f32 %v520_v17, %v518_v48  ;;  %v566_v61 = vmul.f32 %v565_v62, %v274_v58  ;;  %v567_v6 = vstv %s1433_s19  ;;  %v570_v7 = vstv %s1456_s25 }
  0xca   :  { %v538_v51 = vadd.f32 %v537_v13, %v535_v32  ;;  %s1492_s30 = sld [smem:[#allocation3 + $0x91]]  ;;  %v576_v9 = vstv %s1460_s16  ;;  %v568_v50 = vmul.f32 %v567_v6, %v306_v63  ;;  %v571_v49 = vmul.f32 %v570_v7, %v306_v63 }
  0xcb   :  { %s1498_s14 = sld [smem:[#allocation3 + $0x89]]  ;;  %v524_v2 = vadd.f32 %v523_v18, %v521_v34  ;;  %v574_v58 = vmul.f32 %v573_v15, %v338_v19  ;;  %v577_v3 = vmul.f32 %v576_v9, %v338_v19  ;;  %v579_v17 = vstv %s1446_s11 }
  0xcc   :  { %v541_v44 = vadd.f32 %v540_v14, %v538_v51  ;;  %s1504_s22 = sld [smem:[#allocation3 + $0x92]]  ;;  %v582_v18 = vstv %s1469_s29  ;;  %v569_v54 = vadd.f32 %v568_v50, %v564_v4  ;;  %v572_v23 = vadd.f32 %v571_v49, %v566_v61  ;;  %v192_v49 = vld [vmem:[#allocation4] sm:$0xff] }
  0xcd   :  { %s1510_s13 = sld [smem:[#allocation3 + $0x8a]]  ;;  %v527_v10 = vadd.f32 %v526_v20, %v524_v2  ;;  %v580_v63 = vmul.f32 %v579_v17, %v370_v59  ;;  %v583_v0 = vmul.f32 %v582_v18, %v370_v59  ;;  %v585_v19 = vstv %s1466_s28 }
  0xce   :  { %v544_v1 = vadd.f32 %v543_v41, %v541_v44  ;;  %s1516_s3 = sld [smem:[#allocation3 + $0x93]]  ;;  %v588_v25 = vstv %s1482_s18  ;;  %v578_v8 = vadd.f32 %v577_v3, %v572_v23  ;;  %v586_v30 = vmul.f32 %v585_v19, %v402_v27 }
  0xcf   :  { %s1524_s4 = sld [smem:[#allocation3 + $0x94]]  ;;  %v529_v20 = vadd.f32 %v528_v12, %v527_v10  ;;  %v575_v12 = vadd.f32 %v574_v58, %v569_v54  ;;  %v589_v31 = vmul.f32 %v588_v25, %v402_v27  ;;  %v591_v36 = vstv %s1475_s23  ;;  %v823_v58 = vld [vmem:[#allocation4 + $0x8] sm:$0xff] }
  0xd0   :  { %v547_v11 = vadd.f32 %v546_v42, %v544_v1  ;;  %s1528_s5 = sld [smem:[#allocation3 + $0x95]]  ;;  %v594_v38 = vstv %s1492_s30  ;;  %v584_v39 = vadd.f32 %v583_v0, %v578_v8  ;;  %v592_v40 = vmul.f32 %v591_v36, %v434_v5 }
  0xd1   :  { %v530_v26 = vmax.f32 %v529_v20, 0.0  ;;  %s1542_s26 = sld [smem:[#allocation3 + $0x8b]]  ;;  %v581_v59 = vadd.f32 %v580_v63, %v575_v12  ;;  %v595_v32 = vmul.f32 %v594_v38, %v434_v5  ;;  %v597_v13 = vstv %s1488_s24 }
  0xd2   :  { %v550_v22 = vadd.f32 %v549_v21, %v547_v11  ;;  %v600_v35 = vstv %s1504_s22  ;;  %v603_v27 = vstv %s1498_s14  ;;  %v590_v42 = vadd.f32 %v589_v31, %v584_v39  ;;  %s811_s2 = sld [smem:[#allocation3 + $0x97]] }
  0xd3   :  { %v587_v41 = vadd.f32 %v586_v30, %v581_v59  ;;  %v598_v43 = vmul.f32 %v597_v13, %v466_v16  ;;  %v601_v48 = vmul.f32 %v600_v35, %v466_v16  ;;  %v604_v51 = vmul.f32 %v603_v27, %v498_v45  ;;  %s810_s6 = sld [smem:[#allocation3 + $0x96]] }
  0xd4   :  { %v553_v28 = vadd.f32 %v552_v56, %v550_v22  ;;  %v606_v24 = vstv %s1516_s3  ;;  %v609_v5 = vstv %s1510_s13  ;;  %v596_v29 = vadd.f32 %v595_v32, %v590_v42  ;;  %s812_s7 = sld [smem:[#allocation3 + $0x98]] }
  0xd5   :  { %v593_v52 = vadd.f32 %v592_v40, %v587_v41  ;;  %v607_v55 = vmul.f32 %v606_v24, %v498_v45  ;;  %v612_v34 = vstv %s1524_s4  ;;  %v610_v16 = vmul.f32 %v609_v5, %v530_v26  ;;  %s813_s9 = sld [smem:[#allocation3 + $0x99]] }
  0xd6   :  { %v556_v47 = vadd.f32 %v555_v53, %v553_v28  ;;  %v618_v44 = vstv %s1528_s5  ;;  %v613_v46 = vmul.f32 %v612_v34, %v530_v26  ;;  %s814_s27 = sld [smem:[#allocation3 + $0x9a]] }
  0xd7   :  { %v599_v53 = vadd.f32 %v598_v43, %v593_v52  ;;  %v615_v2 = vstv %s1542_s26  ;;  %s1621_s19 = sld [smem:[#allocation35_spill]] }
  0xd8   :  { %v559_v14 = vadd.f32 %v558_v57, %v556_v47  ;;  %v602_v57 = vadd.f32 %v601_v48, %v596_v29  ;;  %v623_v6 = vstv %s811_s2 }
  0xd9   :  { %v605_v60 = vadd.f32 %v604_v51, %v599_v53  ;;  %v621_v15 = vstv %s810_s6 }
  0xda   :  { %v561_v21 = vadd.f32 %v560_v37, %v559_v14  ;;  %v608_v62 = vadd.f32 %v607_v55, %v602_v57  ;;  %v625_v10 = vstv %s812_s7 }
  0xdb   :  { %v611_v37 = vadd.f32 %v610_v16, %v605_v60  ;;  %v626_v3 = vmul.f32 %v823_v58, %v625_v10  ;;  %v627_v17 = vstv %s813_s9 }
  0xdc   :  { %v562_v56 = vmax.f32 %v561_v21, 0.0  ;;  %v614_v4 = vadd.f32 %v613_v46, %v608_v62  ;;  %v635_v0 = vstv %s814_s27 }
  0xdd   :  { %v628_v20 = vsub.f32 %v626_v3, %v627_v17  ;;  %s650_s1 = sshll.u32 %s1621_s19, 4  ;;  %s651_s1 = int_to_ptr.hbm [resolvable:$true] %s650_s1 }
  0xde   :  { %v619_v1 = vmul.f32 %v618_v44, %v562_v56  ;;  %v616_v61 = vmul.f32 %v615_v2, %v562_v56 }
  0xdf   :  { %v637_v63 = vmul.f32 %v628_v20, %v628_v20 }
  0xe0   :  { %v620_v7 = vadd.f32 %v619_v1, %v614_v4  ;;  %v617_v45 = vadd.f32 %v616_v61, %v611_v37 }
  0xe2   :  { %v624_v33 = vadd.f32 %v623_v6, %v620_v7  ;;  %v622_v50 = vadd.f32 %v621_v15, %v617_v45 }
  0xe4   :  { %v630_v9 = vsub.f32 0.0, %v624_v33  ;;  %v629_v18 = vsub.f32 %v192_v49, %v622_v50  ;;  %v636_v25 = vsub.f32 %v635_v0, %v624_v33 }
  0xe6   :  { %v631_v11 = vmul.f32 1.442695, %v630_v9 }
  0xe8   :  { %821 = vpow2.f32 %v631_v11 }
  0xee   :  { %v822_v22 = vpop.eup %821 }
  0xef   :  { %v633_v54 = vmul.f32 %v822_v22, %v629_v18 }
  0xf1   :  { %v815_v23 = vadd.f32 -1.0, %v633_v54 }
  0xf3   :  { %v638_v19 = vmul.f32 %v815_v23, %v815_v23 }
  0xf5   :  { %v639_v26 = vadd.f32 %v638_v19, %v637_v63 }
  0xf7   :  { %v640_v28 = vmul.f32 0.5, %v639_v26 }
  0xf9   :  { %v641_v12 = vsub.f32 %v636_v25, %v640_v28 }
  0xfb   :  { %642 = vst [vmem:[#allocation7] sm:$0xff] %v641_v12 }
  0xfc   :  { %653 = dma.vmem_to_hbm [thread:$0]  %s649_s8, 128, %s651_s1, [#allocation6]  }
  0xfd   :  { %888 = dma.done.wait [#allocation6], 128  }
  0xfe   :  { %889 = vsyncadd [#allocation6], 4294967168 }
  0xff   :  { %658 = vsyncpa [#allocation5], 1 }
 0x100   :  { %659 = vsyncpa [#allocation6], 1 }

</bundles_post_ra>
